<compile_context>
chip_gen: v7x
topology: tpu7x:2x2x1
jax: 0.10.0
libtpu: 0.0.40
codegen_flags: <defaults>
</compile_context>

<pallas_src>
import jax
import jax.numpy as jnp
import numpy as np
from jax.experimental import pallas as pl
from jax.experimental.pallas import tpu as pltpu

# small, CLIP-like synthetic sizes
B, L, D, H, LAYERS, PROJ = 2, 8, 32, 4, 2, 16
DH = D // H
MLP = 4 * D
EPS = 1e-5
BL = B * L
PROJ_PAD = 128          # lane-dense output slab; sliced back to PROJ in the wrapper

# layout of the packed small-operand slab (rows of a (VEC_ROWS_PAD, 128) f32 array)
ROWS_PER_LAYER = 8      # ln1_w, ln1_b, b_o, ln2_w, ln2_b, b2, b_qkv, b1
LNF_ROW = LAYERS * ROWS_PER_LAYER          # ln_final_w, ln_final_b
POS_ROW = LNF_ROW + 2                      # positional embedding rows (L of them)
VEC_ROWS_PAD = 32


# ---------------------------------------------------------------- helpers
def _layernorm(x, w, b):
    mu = jnp.mean(x, axis=-1, keepdims=True)
    var = jnp.mean((x - mu) ** 2, axis=-1, keepdims=True)
    return (x - mu) * jax.lax.rsqrt(var + EPS) * w + b


def _split_heads(t):
    """(L, D) -> (H, L, DH); static lane slices + stack (head-major lane order)."""
    return jnp.stack([t[:, h * DH:(h + 1) * DH] for h in range(H)], axis=0)


# ---------------------------------------------------------------- fused kernel
def text_encoder_kernel(x_ref, eot_ref, vec_ref, wqkvo_ref, w1_ref, w2_ref,
                        proj_ref, o_ref):
    f32 = jnp.float32
    scale = DH ** -0.5

    # positional embedding lives in the packed slab; tile over batches in-kernel
    pos = vec_ref[POS_ROW:POS_ROW + L, :D]                          # (L, D)
    x = x_ref[...] + jnp.concatenate([pos] * B, axis=0)             # (BL, D)

    # (L, L) additive causal mask, built once (hoisted out of the layer loop)
    qi = jax.lax.broadcasted_iota(jnp.int32, (L, L), 0)
    ki = jax.lax.broadcasted_iota(jnp.int32, (L, L), 1)
    causal = jnp.where(ki <= qi, 0.0, -1e30).astype(f32)            # broadcasts over heads

    # Static unroll over layers (LAYERS=2); all weights stay VMEM-resident.
    for li in range(LAYERS):
        r = li * ROWS_PER_LAYER
        ln1_w = vec_ref[r + 0:r + 1, :D]
        ln1_b = vec_ref[r + 1:r + 2, :D]
        b_o   = vec_ref[r + 2:r + 3, :D]
        ln2_w = vec_ref[r + 3:r + 4, :D]
        ln2_b = vec_ref[r + 4:r + 5, :D]
        b2    = vec_ref[r + 5:r + 6, :D]
        b_qkv = vec_ref[r + 6:r + 7, :3 * D]
        b1    = vec_ref[r + 7:r + 8, :MLP]

        w_slab = wqkvo_ref[li]                       # (D, 128) lane-dense: [wqkv | wo]
        wqkv = w_slab[:, :3 * D]                     # (D, 3D)
        wo   = w_slab[:, 3 * D:]                     # (D, D)

        # ---- multi-head causal self-attention
        xn = _layernorm(x, ln1_w, ln1_b)
        qkv = jnp.dot(xn, wqkv, preferred_element_type=f32) + b_qkv     # (BL, 3D), one MXU feed
        q = qkv[:, 0:D] * scale
        k = qkv[:, D:2 * D]
        v = qkv[:, 2 * D:3 * D]

        o_rows = []
        for b in range(B):                           # per-batch attention, plain (L,L) mask
            s0 = b * L
            qb = _split_heads(q[s0:s0 + L])          # (H, L, DH)
            kb = _split_heads(k[s0:s0 + L])
            vb = _split_heads(v[s0:s0 + L])
            s = jnp.einsum('hqd,hkd->hqk', qb, kb,
                           preferred_element_type=f32) + causal         # (H, L, L)
            m = jnp.max(s, axis=-1, keepdims=True)
            e = jnp.exp(s - m)
            p = e * pl.reciprocal(jnp.sum(e, axis=-1, keepdims=True), approx=True)
            ob = jnp.einsum('hqk,hkd->hqd', p, vb,
                            preferred_element_type=f32)                 # (H, L, DH)
            # re-concatenate heads along lanes (head-major) -> (L, D)
            o_rows.append(jnp.concatenate([ob[h] for h in range(H)], axis=-1))
        o_cat = jnp.concatenate(o_rows, axis=0)                         # (BL, D)
        # head concat already matches W_o's input layout -> one full-width matmul
        x = x + jnp.dot(o_cat, wo, preferred_element_type=f32) + b_o

        # ---- MLP with QuickGELU (x * sigmoid(1.702 x), as in CLIP)
        xn2 = _layernorm(x, ln2_w, ln2_b)
        h1 = jnp.dot(xn2, w1_ref[li], preferred_element_type=f32) + b1
        h1 = h1 * jax.nn.sigmoid(1.702 * h1)
        x = x + jnp.dot(h1, w2_ref[li], preferred_element_type=f32) + b2

    # ---- EOT-row gather via one-hot matmul (indices read from SMEM), ln_final, proj
    cols = jax.lax.broadcasted_iota(jnp.int32, (1, BL), 1)
    onehot = jnp.concatenate(
        [(cols == (b * L + eot_ref[b])).astype(f32) for b in range(B)], axis=0)  # (B, BL)
    sel = jnp.dot(onehot, x, preferred_element_type=f32)                          # (B, D)
    sel = _layernorm(sel,
                     vec_ref[LNF_ROW:LNF_ROW + 1, :D],
                     vec_ref[LNF_ROW + 1:LNF_ROW + 2, :D])
    o_ref[...] = jnp.dot(sel, proj_ref[...], preferred_element_type=f32)  # (B, 128) lane-dense


# ---------------------------------------------------------------- host-side packing
def _pack_params(params):
    """Pack all tiny vectors into one lane-dense (32,128) slab and the matmul
    weights into pre-transposed [in, out] stacks; wqkv|wo share a (D,128) slab."""
    vec = np.zeros((VEC_ROWS_PAD, 128), np.float32)
    wqkvo, w1s, w2s = [], [], []
    for li, lp in enumerate(params['layers']):
        r = li * ROWS_PER_LAYER
        vec[r + 0, :D] = np.asarray(lp['ln1_w']).reshape(D)
        vec[r + 1, :D] = np.asarray(lp['ln1_b']).reshape(D)
        vec[r + 2, :D] = np.asarray(lp['b_o']).reshape(D)
        vec[r + 3, :D] = np.asarray(lp['ln2_w']).reshape(D)
        vec[r + 4, :D] = np.asarray(lp['ln2_b']).reshape(D)
        vec[r + 5, :D] = np.asarray(lp['b2']).reshape(D)
        vec[r + 6, :3 * D] = np.asarray(lp['b_qkv']).reshape(3 * D)
        vec[r + 7, :MLP] = np.asarray(lp['b1']).reshape(MLP)
        # PyTorch [out, in] -> [in, out]; q/k/v column blocks stay head-major.
        wqkvo.append(jnp.concatenate([lp['w_qkv'].T, lp['w_o'].T], axis=1))  # (D, 4D=128)
        w1s.append(lp['w1'].T)                                               # (D, MLP)
        w2s.append(lp['w2'].T)                                               # (MLP, D)
    vec[LNF_ROW, :D] = np.asarray(params['ln_final_w']).reshape(D)
    vec[LNF_ROW + 1, :D] = np.asarray(params['ln_final_b']).reshape(D)
    vec[POS_ROW:POS_ROW + L, :D] = np.asarray(params['pos'])

    proj_pad = np.zeros((D, PROJ_PAD), np.float32)
    proj_pad[:, :PROJ] = np.asarray(params['text_projection'])

    return (jnp.asarray(vec), jnp.stack(wqkvo), jnp.stack(w1s), jnp.stack(w2s),
            jnp.asarray(proj_pad))


# ---------------------------------------------------------------- wrapper
def text_encoder_forward(prompts, tokenized_prompts, params):
    x_flat = prompts.reshape(BL, D)                                   # row b*L + l
    eot = jnp.argmax(tokenized_prompts, axis=-1).astype(jnp.int32)    # (B,) glue
    vec_slab, wqkvo, w1s, w2s, proj_pad = _pack_params(params)

    full = lambda shape: pl.BlockSpec(shape, lambda: (0,) * len(shape))
    out = pl.pallas_call(
        text_encoder_kernel,
        out_shape=jax.ShapeDtypeStruct((B, PROJ_PAD), jnp.float32),
        in_specs=[full((BL, D)),
                  pl.BlockSpec(memory_space=pltpu.MemorySpace.SMEM),   # eot indices
                  full((VEC_ROWS_PAD, 128)),
                  full((LAYERS, D, 4 * D)),
                  full((LAYERS, D, MLP)),
                  full((LAYERS, MLP, D)),
                  full((D, PROJ_PAD))],
        out_specs=full((B, PROJ_PAD)),
    )(x_flat, eot, vec_slab, wqkvo, w1s, w2s, proj_pad)
    return out[:, :PROJ]


# ---------------------------------------------------------------- params
def init_params(key):
    ks = jax.random.split(key, 4 + LAYERS)

    def nrm(k, shape, s=0.02):
        return (s * jax.random.normal(k, shape)).astype(jnp.float32)

    params = {
        'pos': nrm(ks[0], (L, D)),
        'ln_final_w': 1.0 + nrm(ks[1], (1, D), 0.05),
        'ln_final_b': nrm(ks[2], (1, D), 0.05),
        'text_projection': nrm(ks[3], (D, PROJ)),
        'layers': [],
    }
    for i in range(LAYERS):
        lk = jax.random.split(ks[4 + i], 12)
        params['layers'].append({
            'ln1_w': 1.0 + nrm(lk[0], (1, D), 0.05),
            'ln1_b': nrm(lk[1], (1, D), 0.05),
            'w_qkv': nrm(lk[2], (3 * D, D)),
            'b_qkv': nrm(lk[3], (1, 3 * D)),
            'w_o': nrm(lk[4], (D, D)),
            'b_o': nrm(lk[5], (1, D)),
            'ln2_w': 1.0 + nrm(lk[6], (1, D), 0.05),
            'ln2_b': nrm(lk[7], (1, D), 0.05),
            'w1': nrm(lk[8], (MLP, D)),
            'b1': nrm(lk[9], (1, MLP)),
            'w2': nrm(lk[10], (D, MLP)),
            'b2': nrm(lk[11], (1, D)),
        })
    return params


# ---------------------------------------------------------------- pure-JAX reference
def ref_forward(prompts, tokenized_prompts, params):
    hp = jax.lax.Precision.HIGHEST
    x = prompts + params['pos'][None]
    scale = DH ** -0.5
    causal = (jnp.arange(L)[None, :] <= jnp.arange(L)[:, None])
    for lp in params['layers']:
        xn = _layernorm(x, lp['ln1_w'], lp['ln1_b'])
        qkv = jnp.einsum('bld,od->blo', xn, lp['w_qkv'], precision=hp) + lp['b_qkv']
        q, k, v = jnp.split(qkv, 3, axis=-1)
        q = q.reshape(B, L, H, DH).transpose(0, 2, 1, 3) * scale
        k = k.reshape(B, L, H, DH).transpose(0, 2, 1, 3)
        v = v.reshape(B, L, H, DH).transpose(0, 2, 1, 3)
        s = jnp.einsum('bhqd,bhkd->bhqk', q, k, precision=hp)
        s = jnp.where(causal[None, None], s, -1e30)
        p = jax.nn.softmax(s, axis=-1)
        o = jnp.einsum('bhqk,bhkd->bhqd', p, v, precision=hp)
        o = o.transpose(0, 2, 1, 3).reshape(B, L, D)
        x = x + jnp.einsum('bld,od->blo', o, lp['w_o'], precision=hp) + lp['b_o']
        xn2 = _layernorm(x, lp['ln2_w'], lp['ln2_b'])
        hdn = jnp.einsum('bld,od->blo', xn2, lp['w1'], precision=hp) + lp['b1']
        hdn = hdn * jax.nn.sigmoid(1.702 * hdn)
        x = x + jnp.einsum('bld,od->blo', hdn, lp['w2'], precision=hp) + lp['b2']
    x = _layernorm(x, params['ln_final_w'], params['ln_final_b'])
    eot = jnp.argmax(tokenized_prompts, axis=-1)
    sel = x[jnp.arange(B), eot]
    return jnp.einsum('bd,dp->bp', sel, params['text_projection'], precision=hp)


# ---------------------------------------------------------------- main
if __name__ == "__main__":
    key = jax.random.PRNGKey(0)
    kp, kt, kw = jax.random.split(key, 3)

    prompts = jax.random.normal(kp, (B, L, D), dtype=jnp.float32)
    tokenized_prompts = jax.random.randint(kt, (B, L), 0, 1000, dtype=jnp.int32)
    params = init_params(kw)

    out = text_encoder_forward(prompts, tokenized_prompts, params)
    out = jax.block_until_ready(out)

    ref = ref_forward(prompts, tokenized_prompts, params)
    assert out.shape == (B, PROJ), out.shape
    assert np.allclose(np.asarray(out), np.asarray(ref), atol=1e-3, rtol=1e-2), (
        np.max(np.abs(np.asarray(out) - np.asarray(ref))))

    print("KERNEL_OK")
</pallas_src>

<mosaic_0001>
module attributes {stable_mosaic.version = 11 : i64} {
  func.func @text_encoder_kernel(%arg0: memref<16x32xf32, #tpu.memory_space<vmem>>, %arg1: memref<2xi32, #tpu.memory_space<smem>>, %arg2: memref<32x128xf32, #tpu.memory_space<vmem>>, %arg3: memref<2x32x128xf32, #tpu.memory_space<vmem>>, %arg4: memref<2x32x128xf32, #tpu.memory_space<vmem>>, %arg5: memref<2x128x32xf32, #tpu.memory_space<vmem>>, %arg6: memref<32x128xf32, #tpu.memory_space<vmem>>, %arg7: memref<2x128xf32, #tpu.memory_space<vmem>>) attributes {dimension_semantics = [], scalar_prefetch = 0 : i64, scratch_operands = 0 : i64, tpu.core_type = #tpu.core_type<tc>} {
    %c18 = arith.constant 18 : index
    %c0 = arith.constant 0 : index
    %0 = vector.load %arg2[%c18, %c0] : memref<32x128xf32, #tpu.memory_space<vmem>>, vector<8x32xf32>
    %c0_0 = arith.constant 0 : index
    %c0_1 = arith.constant 0 : index
    %1 = vector.load %arg0[%c0_0, %c0_1] : memref<16x32xf32, #tpu.memory_space<vmem>>, vector<16x32xf32>
    %2 = tpu.concatenate %0, %0 in 0 : vector<8x32xf32>, vector<8x32xf32> -> vector<16x32xf32>
    %3 = arith.addf %1, %2 : vector<16x32xf32>
    %4 = tpu.iota {dimensions = array<i32: 0>} : vector<8x8xi32>
    %5 = tpu.iota {dimensions = array<i32: 1>} : vector<8x8xi32>
    %6 = arith.cmpi sle, %5, %4 : vector<8x8xi32>
    %cst = arith.constant 0.000000e+00 : f32
    %cst_2 = arith.constant -1.000000e+30 : f32
    %7 = vector.broadcast %cst : f32 to vector<8x8xf32>
    %8 = vector.broadcast %cst_2 : f32 to vector<8x8xf32>
    %9 = arith.select %6, %7, %8 : vector<8x8xi1>, vector<8x8xf32>
    %c0_3 = arith.constant 0 : index
    %c0_4 = arith.constant 0 : index
    %10 = vector.load %arg2[%c0_3, %c0_4] : memref<32x128xf32, #tpu.memory_space<vmem>>, vector<1x32xf32>
    %c1 = arith.constant 1 : index
    %c0_5 = arith.constant 0 : index
    %11 = vector.load %arg2[%c1, %c0_5] : memref<32x128xf32, #tpu.memory_space<vmem>>, vector<1x32xf32>
    %c2 = arith.constant 2 : index
    %c0_6 = arith.constant 0 : index
    %12 = vector.load %arg2[%c2, %c0_6] : memref<32x128xf32, #tpu.memory_space<vmem>>, vector<1x32xf32>
    %c3 = arith.constant 3 : index
    %c0_7 = arith.constant 0 : index
    %13 = vector.load %arg2[%c3, %c0_7] : memref<32x128xf32, #tpu.memory_space<vmem>>, vector<1x32xf32>
    %c4 = arith.constant 4 : index
    %c0_8 = arith.constant 0 : index
    %14 = vector.load %arg2[%c4, %c0_8] : memref<32x128xf32, #tpu.memory_space<vmem>>, vector<1x32xf32>
    %c5 = arith.constant 5 : index
    %c0_9 = arith.constant 0 : index
    %15 = vector.load %arg2[%c5, %c0_9] : memref<32x128xf32, #tpu.memory_space<vmem>>, vector<1x32xf32>
    %c6 = arith.constant 6 : index
    %c0_10 = arith.constant 0 : index
    %16 = vector.load %arg2[%c6, %c0_10] : memref<32x128xf32, #tpu.memory_space<vmem>>, vector<1x96xf32>
    %c7 = arith.constant 7 : index
    %c0_11 = arith.constant 0 : index
    %17 = vector.load %arg2[%c7, %c0_11] : memref<32x128xf32, #tpu.memory_space<vmem>>, vector<1x128xf32>
    %c0_12 = arith.constant 0 : index
    %c0_13 = arith.constant 0 : index
    %c0_14 = arith.constant 0 : index
    %18 = vector.load %arg3[%c0_12, %c0_13, %c0_14] : memref<2x32x128xf32, #tpu.memory_space<vmem>>, vector<1x32x128xf32>
    %19 = vector.shape_cast %18 : vector<1x32x128xf32> to vector<32x128xf32>
    %20 = vector.extract_strided_slice %19 {offsets = [0, 0], sizes = [32, 96], strides = [1, 1]} : vector<32x128xf32> to vector<32x96xf32>
    %21 = vector.extract_strided_slice %19 {offsets = [0, 96], sizes = [32, 32], strides = [1, 1]} : vector<32x128xf32> to vector<32x32xf32>
    %cst_15 = arith.constant dense<0.000000e+00> : vector<16xf32>
    %22 = vector.multi_reduction <add>, %3, %cst_15 [1] : vector<16x32xf32> to vector<16xf32>
    %23 = vector.shape_cast %22 : vector<16xf32> to vector<16x1xf32>
    %cst_16 = arith.constant 3.200000e+01 : f32
    %24 = vector.broadcast %cst_16 : f32 to vector<16x1xf32>
    %25 = arith.divf %23, %24 : vector<16x1xf32>
    %26 = vector.broadcast %25 : vector<16x1xf32> to vector<16x32xf32>
    %27 = arith.subf %3, %26 : vector<16x32xf32>
    %28 = arith.mulf %27, %27 : vector<16x32xf32>
    %cst_17 = arith.constant dense<0.000000e+00> : vector<16xf32>
    %29 = vector.multi_reduction <add>, %28, %cst_17 [1] : vector<16x32xf32> to vector<16xf32>
    %30 = vector.shape_cast %29 : vector<16xf32> to vector<16x1xf32>
    %cst_18 = arith.constant 3.200000e+01 : f32
    %31 = vector.broadcast %cst_18 : f32 to vector<16x1xf32>
    %32 = arith.divf %30, %31 : vector<16x1xf32>
    %33 = vector.broadcast %25 : vector<16x1xf32> to vector<16x32xf32>
    %34 = arith.subf %3, %33 : vector<16x32xf32>
    %cst_19 = arith.constant 9.99999974E-6 : f32
    %35 = vector.broadcast %cst_19 : f32 to vector<16x1xf32>
    %36 = arith.addf %32, %35 : vector<16x1xf32>
    %37 = math.rsqrt %36 : vector<16x1xf32>
    %38 = vector.broadcast %37 : vector<16x1xf32> to vector<16x32xf32>
    %39 = arith.mulf %34, %38 : vector<16x32xf32>
    %40 = vector.broadcast %10 : vector<1x32xf32> to vector<16x32xf32>
    %41 = arith.mulf %39, %40 : vector<16x32xf32>
    %42 = vector.broadcast %11 : vector<1x32xf32> to vector<16x32xf32>
    %43 = arith.addf %41, %42 : vector<16x32xf32>
    %cst_20 = arith.constant dense<0.000000e+00> : vector<16x96xf32>
    %44 = tpu.matmul %43, %20, %cst_20 {dimension_numbers = #tpu.dot_dimension_numbers<[1], [0], [0], [1], [0, 0, 1, 1], [], []>} : vector<16x32xf32>, vector<32x96xf32>, vector<16x96xf32> -> vector<16x96xf32>
    %45 = vector.broadcast %16 : vector<1x96xf32> to vector<16x96xf32>
    %46 = arith.addf %44, %45 : vector<16x96xf32>
    %47 = vector.extract_strided_slice %46 {offsets = [0, 0], sizes = [16, 32], strides = [1, 1]} : vector<16x96xf32> to vector<16x32xf32>
    %cst_21 = arith.constant 0.353553385 : f32
    %48 = vector.broadcast %cst_21 : f32 to vector<16x32xf32>
    %49 = arith.mulf %47, %48 : vector<16x32xf32>
    %50 = vector.extract_strided_slice %46 {offsets = [0, 32], sizes = [16, 32], strides = [1, 1]} : vector<16x96xf32> to vector<16x32xf32>
    %51 = vector.extract_strided_slice %46 {offsets = [0, 64], sizes = [16, 32], strides = [1, 1]} : vector<16x96xf32> to vector<16x32xf32>
    %52 = vector.extract_strided_slice %49 {offsets = [0, 0], sizes = [8, 32], strides = [1, 1]} : vector<16x32xf32> to vector<8x32xf32>
    %53 = vector.extract_strided_slice %52 {offsets = [0, 0], sizes = [8, 8], strides = [1, 1]} : vector<8x32xf32> to vector<8x8xf32>
    %54 = vector.extract_strided_slice %52 {offsets = [0, 8], sizes = [8, 8], strides = [1, 1]} : vector<8x32xf32> to vector<8x8xf32>
    %55 = vector.extract_strided_slice %52 {offsets = [0, 16], sizes = [8, 8], strides = [1, 1]} : vector<8x32xf32> to vector<8x8xf32>
    %56 = vector.extract_strided_slice %52 {offsets = [0, 24], sizes = [8, 8], strides = [1, 1]} : vector<8x32xf32> to vector<8x8xf32>
    %57 = vector.shape_cast %53 : vector<8x8xf32> to vector<1x8x8xf32>
    %58 = vector.shape_cast %54 : vector<8x8xf32> to vector<1x8x8xf32>
    %59 = vector.shape_cast %55 : vector<8x8xf32> to vector<1x8x8xf32>
    %60 = vector.shape_cast %56 : vector<8x8xf32> to vector<1x8x8xf32>
    %61 = tpu.concatenate %57, %58, %59, %60 in 0 : vector<1x8x8xf32>, vector<1x8x8xf32>, vector<1x8x8xf32>, vector<1x8x8xf32> -> vector<4x8x8xf32>
    %62 = vector.extract_strided_slice %50 {offsets = [0, 0], sizes = [8, 32], strides = [1, 1]} : vector<16x32xf32> to vector<8x32xf32>
    %63 = vector.extract_strided_slice %62 {offsets = [0, 0], sizes = [8, 8], strides = [1, 1]} : vector<8x32xf32> to vector<8x8xf32>
    %64 = vector.extract_strided_slice %62 {offsets = [0, 8], sizes = [8, 8], strides = [1, 1]} : vector<8x32xf32> to vector<8x8xf32>
    %65 = vector.extract_strided_slice %62 {offsets = [0, 16], sizes = [8, 8], strides = [1, 1]} : vector<8x32xf32> to vector<8x8xf32>
    %66 = vector.extract_strided_slice %62 {offsets = [0, 24], sizes = [8, 8], strides = [1, 1]} : vector<8x32xf32> to vector<8x8xf32>
    %67 = vector.shape_cast %63 : vector<8x8xf32> to vector<1x8x8xf32>
    %68 = vector.shape_cast %64 : vector<8x8xf32> to vector<1x8x8xf32>
    %69 = vector.shape_cast %65 : vector<8x8xf32> to vector<1x8x8xf32>
    %70 = vector.shape_cast %66 : vector<8x8xf32> to vector<1x8x8xf32>
    %71 = tpu.concatenate %67, %68, %69, %70 in 0 : vector<1x8x8xf32>, vector<1x8x8xf32>, vector<1x8x8xf32>, vector<1x8x8xf32> -> vector<4x8x8xf32>
    %72 = vector.extract_strided_slice %51 {offsets = [0, 0], sizes = [8, 32], strides = [1, 1]} : vector<16x32xf32> to vector<8x32xf32>
    %73 = vector.extract_strided_slice %72 {offsets = [0, 0], sizes = [8, 8], strides = [1, 1]} : vector<8x32xf32> to vector<8x8xf32>
    %74 = vector.extract_strided_slice %72 {offsets = [0, 8], sizes = [8, 8], strides = [1, 1]} : vector<8x32xf32> to vector<8x8xf32>
    %75 = vector.extract_strided_slice %72 {offsets = [0, 16], sizes = [8, 8], strides = [1, 1]} : vector<8x32xf32> to vector<8x8xf32>
    %76 = vector.extract_strided_slice %72 {offsets = [0, 24], sizes = [8, 8], strides = [1, 1]} : vector<8x32xf32> to vector<8x8xf32>
    %77 = vector.shape_cast %73 : vector<8x8xf32> to vector<1x8x8xf32>
    %78 = vector.shape_cast %74 : vector<8x8xf32> to vector<1x8x8xf32>
    %79 = vector.shape_cast %75 : vector<8x8xf32> to vector<1x8x8xf32>
    %80 = vector.shape_cast %76 : vector<8x8xf32> to vector<1x8x8xf32>
    %81 = tpu.concatenate %77, %78, %79, %80 in 0 : vector<1x8x8xf32>, vector<1x8x8xf32>, vector<1x8x8xf32>, vector<1x8x8xf32> -> vector<4x8x8xf32>
    "tpu.trace_start"() <{level = 10 : i32, message = "hqd,hkd->hqk"}> : () -> ()
    %cst_22 = arith.constant dense<0.000000e+00> : vector<4x8x8xf32>
    %82 = tpu.matmul %61, %71, %cst_22 {dimension_numbers = #tpu.dot_dimension_numbers<[2], [2], [1], [1], [0, 0, 0, 1, 1, 1], [0], [0]>} : vector<4x8x8xf32>, vector<4x8x8xf32>, vector<4x8x8xf32> -> vector<4x8x8xf32>
    "tpu.trace_stop"() : () -> ()
    %83 = vector.shape_cast %9 : vector<8x8xf32> to vector<1x8x8xf32>
    %84 = vector.broadcast %83 : vector<1x8x8xf32> to vector<4x8x8xf32>
    %85 = arith.addf %82, %84 : vector<4x8x8xf32>
    %cst_23 = arith.constant dense<0xFF800000> : vector<4x8xf32>
    %86 = vector.multi_reduction <maximumf>, %85, %cst_23 [2] : vector<4x8x8xf32> to vector<4x8xf32>
    %87 = vector.shape_cast %86 : vector<4x8xf32> to vector<4x8x1xf32>
    %88 = vector.broadcast %87 : vector<4x8x1xf32> to vector<4x8x8xf32>
    %89 = arith.subf %85, %88 : vector<4x8x8xf32>
    %90 = math.exp %89 : vector<4x8x8xf32>
    %cst_24 = arith.constant dense<0.000000e+00> : vector<4x8xf32>
    %91 = vector.multi_reduction <add>, %90, %cst_24 [2] : vector<4x8x8xf32> to vector<4x8xf32>
    %92 = vector.shape_cast %91 : vector<4x8xf32> to vector<4x8x1xf32>
    %93 = tpu.reciprocal %92 {approx = true} : vector<4x8x1xf32> -> vector<4x8x1xf32>
    %94 = vector.broadcast %93 : vector<4x8x1xf32> to vector<4x8x8xf32>
    %95 = arith.mulf %90, %94 : vector<4x8x8xf32>
    "tpu.trace_start"() <{level = 10 : i32, message = "hqk,hkd->hqd"}> : () -> ()
    %cst_25 = arith.constant dense<0.000000e+00> : vector<4x8x8xf32>
    %96 = tpu.matmul %95, %81, %cst_25 {dimension_numbers = #tpu.dot_dimension_numbers<[2], [1], [1], [2], [0, 0, 0, 1, 1, 2], [0], [0]>} : vector<4x8x8xf32>, vector<4x8x8xf32>, vector<4x8x8xf32> -> vector<4x8x8xf32>
    "tpu.trace_stop"() : () -> ()
    %97 = vector.extract_strided_slice %96 {offsets = [0, 0, 0], sizes = [1, 8, 8], strides = [1, 1, 1]} : vector<4x8x8xf32> to vector<1x8x8xf32>
    %98 = vector.shape_cast %97 : vector<1x8x8xf32> to vector<8x8xf32>
    %99 = vector.extract_strided_slice %96 {offsets = [1, 0, 0], sizes = [1, 8, 8], strides = [1, 1, 1]} : vector<4x8x8xf32> to vector<1x8x8xf32>
    %100 = vector.shape_cast %99 : vector<1x8x8xf32> to vector<8x8xf32>
    %101 = vector.extract_strided_slice %96 {offsets = [2, 0, 0], sizes = [1, 8, 8], strides = [1, 1, 1]} : vector<4x8x8xf32> to vector<1x8x8xf32>
    %102 = vector.shape_cast %101 : vector<1x8x8xf32> to vector<8x8xf32>
    %103 = vector.extract_strided_slice %96 {offsets = [3, 0, 0], sizes = [1, 8, 8], strides = [1, 1, 1]} : vector<4x8x8xf32> to vector<1x8x8xf32>
    %104 = vector.shape_cast %103 : vector<1x8x8xf32> to vector<8x8xf32>
    %105 = tpu.concatenate %98, %100, %102, %104 in 1 : vector<8x8xf32>, vector<8x8xf32>, vector<8x8xf32>, vector<8x8xf32> -> vector<8x32xf32>
    %106 = vector.extract_strided_slice %49 {offsets = [8, 0], sizes = [8, 32], strides = [1, 1]} : vector<16x32xf32> to vector<8x32xf32>
    %107 = vector.extract_strided_slice %106 {offsets = [0, 0], sizes = [8, 8], strides = [1, 1]} : vector<8x32xf32> to vector<8x8xf32>
    %108 = vector.extract_strided_slice %106 {offsets = [0, 8], sizes = [8, 8], strides = [1, 1]} : vector<8x32xf32> to vector<8x8xf32>
    %109 = vector.extract_strided_slice %106 {offsets = [0, 16], sizes = [8, 8], strides = [1, 1]} : vector<8x32xf32> to vector<8x8xf32>
    %110 = vector.extract_strided_slice %106 {offsets = [0, 24], sizes = [8, 8], strides = [1, 1]} : vector<8x32xf32> to vector<8x8xf32>
    %111 = vector.shape_cast %107 : vector<8x8xf32> to vector<1x8x8xf32>
    %112 = vector.shape_cast %108 : vector<8x8xf32> to vector<1x8x8xf32>
    %113 = vector.shape_cast %109 : vector<8x8xf32> to vector<1x8x8xf32>
    %114 = vector.shape_cast %110 : vector<8x8xf32> to vector<1x8x8xf32>
    %115 = tpu.concatenate %111, %112, %113, %114 in 0 : vector<1x8x8xf32>, vector<1x8x8xf32>, vector<1x8x8xf32>, vector<1x8x8xf32> -> vector<4x8x8xf32>
    %116 = vector.extract_strided_slice %50 {offsets = [8, 0], sizes = [8, 32], strides = [1, 1]} : vector<16x32xf32> to vector<8x32xf32>
    %117 = vector.extract_strided_slice %116 {offsets = [0, 0], sizes = [8, 8], strides = [1, 1]} : vector<8x32xf32> to vector<8x8xf32>
    %118 = vector.extract_strided_slice %116 {offsets = [0, 8], sizes = [8, 8], strides = [1, 1]} : vector<8x32xf32> to vector<8x8xf32>
    %119 = vector.extract_strided_slice %116 {offsets = [0, 16], sizes = [8, 8], strides = [1, 1]} : vector<8x32xf32> to vector<8x8xf32>
    %120 = vector.extract_strided_slice %116 {offsets = [0, 24], sizes = [8, 8], strides = [1, 1]} : vector<8x32xf32> to vector<8x8xf32>
    %121 = vector.shape_cast %117 : vector<8x8xf32> to vector<1x8x8xf32>
    %122 = vector.shape_cast %118 : vector<8x8xf32> to vector<1x8x8xf32>
    %123 = vector.shape_cast %119 : vector<8x8xf32> to vector<1x8x8xf32>
    %124 = vector.shape_cast %120 : vector<8x8xf32> to vector<1x8x8xf32>
    %125 = tpu.concatenate %121, %122, %123, %124 in 0 : vector<1x8x8xf32>, vector<1x8x8xf32>, vector<1x8x8xf32>, vector<1x8x8xf32> -> vector<4x8x8xf32>
    %126 = vector.extract_strided_slice %51 {offsets = [8, 0], sizes = [8, 32], strides = [1, 1]} : vector<16x32xf32> to vector<8x32xf32>
    %127 = vector.extract_strided_slice %126 {offsets = [0, 0], sizes = [8, 8], strides = [1, 1]} : vector<8x32xf32> to vector<8x8xf32>
    %128 = vector.extract_strided_slice %126 {offsets = [0, 8], sizes = [8, 8], strides = [1, 1]} : vector<8x32xf32> to vector<8x8xf32>
    %129 = vector.extract_strided_slice %126 {offsets = [0, 16], sizes = [8, 8], strides = [1, 1]} : vector<8x32xf32> to vector<8x8xf32>
    %130 = vector.extract_strided_slice %126 {offsets = [0, 24], sizes = [8, 8], strides = [1, 1]} : vector<8x32xf32> to vector<8x8xf32>
    %131 = vector.shape_cast %127 : vector<8x8xf32> to vector<1x8x8xf32>
    %132 = vector.shape_cast %128 : vector<8x8xf32> to vector<1x8x8xf32>
    %133 = vector.shape_cast %129 : vector<8x8xf32> to vector<1x8x8xf32>
    %134 = vector.shape_cast %130 : vector<8x8xf32> to vector<1x8x8xf32>
    %135 = tpu.concatenate %131, %132, %133, %134 in 0 : vector<1x8x8xf32>, vector<1x8x8xf32>, vector<1x8x8xf32>, vector<1x8x8xf32> -> vector<4x8x8xf32>
    "tpu.trace_start"() <{level = 10 : i32, message = "hqd,hkd->hqk"}> : () -> ()
    %cst_26 = arith.constant dense<0.000000e+00> : vector<4x8x8xf32>
    %136 = tpu.matmul %115, %125, %cst_26 {dimension_numbers = #tpu.dot_dimension_numbers<[2], [2], [1], [1], [0, 0, 0, 1, 1, 1], [0], [0]>} : vector<4x8x8xf32>, vector<4x8x8xf32>, vector<4x8x8xf32> -> vector<4x8x8xf32>
    "tpu.trace_stop"() : () -> ()
    %137 = vector.shape_cast %9 : vector<8x8xf32> to vector<1x8x8xf32>
    %138 = vector.broadcast %137 : vector<1x8x8xf32> to vector<4x8x8xf32>
    %139 = arith.addf %136, %138 : vector<4x8x8xf32>
    %cst_27 = arith.constant dense<0xFF800000> : vector<4x8xf32>
    %140 = vector.multi_reduction <maximumf>, %139, %cst_27 [2] : vector<4x8x8xf32> to vector<4x8xf32>
    %141 = vector.shape_cast %140 : vector<4x8xf32> to vector<4x8x1xf32>
    %142 = vector.broadcast %141 : vector<4x8x1xf32> to vector<4x8x8xf32>
    %143 = arith.subf %139, %142 : vector<4x8x8xf32>
    %144 = math.exp %143 : vector<4x8x8xf32>
    %cst_28 = arith.constant dense<0.000000e+00> : vector<4x8xf32>
    %145 = vector.multi_reduction <add>, %144, %cst_28 [2] : vector<4x8x8xf32> to vector<4x8xf32>
    %146 = vector.shape_cast %145 : vector<4x8xf32> to vector<4x8x1xf32>
    %147 = tpu.reciprocal %146 {approx = true} : vector<4x8x1xf32> -> vector<4x8x1xf32>
    %148 = vector.broadcast %147 : vector<4x8x1xf32> to vector<4x8x8xf32>
    %149 = arith.mulf %144, %148 : vector<4x8x8xf32>
    "tpu.trace_start"() <{level = 10 : i32, message = "hqk,hkd->hqd"}> : () -> ()
    %cst_29 = arith.constant dense<0.000000e+00> : vector<4x8x8xf32>
    %150 = tpu.matmul %149, %135, %cst_29 {dimension_numbers = #tpu.dot_dimension_numbers<[2], [1], [1], [2], [0, 0, 0, 1, 1, 2], [0], [0]>} : vector<4x8x8xf32>, vector<4x8x8xf32>, vector<4x8x8xf32> -> vector<4x8x8xf32>
    "tpu.trace_stop"() : () -> ()
    %151 = vector.extract_strided_slice %150 {offsets = [0, 0, 0], sizes = [1, 8, 8], strides = [1, 1, 1]} : vector<4x8x8xf32> to vector<1x8x8xf32>
    %152 = vector.shape_cast %151 : vector<1x8x8xf32> to vector<8x8xf32>
    %153 = vector.extract_strided_slice %150 {offsets = [1, 0, 0], sizes = [1, 8, 8], strides = [1, 1, 1]} : vector<4x8x8xf32> to vector<1x8x8xf32>
    %154 = vector.shape_cast %153 : vector<1x8x8xf32> to vector<8x8xf32>
    %155 = vector.extract_strided_slice %150 {offsets = [2, 0, 0], sizes = [1, 8, 8], strides = [1, 1, 1]} : vector<4x8x8xf32> to vector<1x8x8xf32>
    %156 = vector.shape_cast %155 : vector<1x8x8xf32> to vector<8x8xf32>
    %157 = vector.extract_strided_slice %150 {offsets = [3, 0, 0], sizes = [1, 8, 8], strides = [1, 1, 1]} : vector<4x8x8xf32> to vector<1x8x8xf32>
    %158 = vector.shape_cast %157 : vector<1x8x8xf32> to vector<8x8xf32>
    %159 = tpu.concatenate %152, %154, %156, %158 in 1 : vector<8x8xf32>, vector<8x8xf32>, vector<8x8xf32>, vector<8x8xf32> -> vector<8x32xf32>
    %160 = tpu.concatenate %105, %159 in 0 : vector<8x32xf32>, vector<8x32xf32> -> vector<16x32xf32>
    %cst_30 = arith.constant dense<0.000000e+00> : vector<16x32xf32>
    %161 = tpu.matmul %160, %21, %cst_30 {dimension_numbers = #tpu.dot_dimension_numbers<[1], [0], [0], [1], [0, 0, 1, 1], [], []>} : vector<16x32xf32>, vector<32x32xf32>, vector<16x32xf32> -> vector<16x32xf32>
    %162 = arith.addf %3, %161 : vector<16x32xf32>
    %163 = vector.broadcast %12 : vector<1x32xf32> to vector<16x32xf32>
    %164 = arith.addf %162, %163 : vector<16x32xf32>
    %cst_31 = arith.constant dense<0.000000e+00> : vector<16xf32>
    %165 = vector.multi_reduction <add>, %164, %cst_31 [1] : vector<16x32xf32> to vector<16xf32>
    %166 = vector.shape_cast %165 : vector<16xf32> to vector<16x1xf32>
    %cst_32 = arith.constant 3.200000e+01 : f32
    %167 = vector.broadcast %cst_32 : f32 to vector<16x1xf32>
    %168 = arith.divf %166, %167 : vector<16x1xf32>
    %169 = vector.broadcast %168 : vector<16x1xf32> to vector<16x32xf32>
    %170 = arith.subf %164, %169 : vector<16x32xf32>
    %171 = arith.mulf %170, %170 : vector<16x32xf32>
    %cst_33 = arith.constant dense<0.000000e+00> : vector<16xf32>
    %172 = vector.multi_reduction <add>, %171, %cst_33 [1] : vector<16x32xf32> to vector<16xf32>
    %173 = vector.shape_cast %172 : vector<16xf32> to vector<16x1xf32>
    %cst_34 = arith.constant 3.200000e+01 : f32
    %174 = vector.broadcast %cst_34 : f32 to vector<16x1xf32>
    %175 = arith.divf %173, %174 : vector<16x1xf32>
    %176 = vector.broadcast %168 : vector<16x1xf32> to vector<16x32xf32>
    %177 = arith.subf %164, %176 : vector<16x32xf32>
    %cst_35 = arith.constant 9.99999974E-6 : f32
    %178 = vector.broadcast %cst_35 : f32 to vector<16x1xf32>
    %179 = arith.addf %175, %178 : vector<16x1xf32>
    %180 = math.rsqrt %179 : vector<16x1xf32>
    %181 = vector.broadcast %180 : vector<16x1xf32> to vector<16x32xf32>
    %182 = arith.mulf %177, %181 : vector<16x32xf32>
    %183 = vector.broadcast %13 : vector<1x32xf32> to vector<16x32xf32>
    %184 = arith.mulf %182, %183 : vector<16x32xf32>
    %185 = vector.broadcast %14 : vector<1x32xf32> to vector<16x32xf32>
    %186 = arith.addf %184, %185 : vector<16x32xf32>
    %c0_36 = arith.constant 0 : index
    %c0_37 = arith.constant 0 : index
    %c0_38 = arith.constant 0 : index
    %187 = vector.load %arg4[%c0_36, %c0_37, %c0_38] : memref<2x32x128xf32, #tpu.memory_space<vmem>>, vector<1x32x128xf32>
    %188 = vector.shape_cast %187 : vector<1x32x128xf32> to vector<32x128xf32>
    %cst_39 = arith.constant dense<0.000000e+00> : vector<16x128xf32>
    %189 = tpu.matmul %186, %188, %cst_39 {dimension_numbers = #tpu.dot_dimension_numbers<[1], [0], [0], [1], [0, 0, 1, 1], [], []>} : vector<16x32xf32>, vector<32x128xf32>, vector<16x128xf32> -> vector<16x128xf32>
    %190 = vector.broadcast %17 : vector<1x128xf32> to vector<16x128xf32>
    %191 = arith.addf %189, %190 : vector<16x128xf32>
    %cst_40 = arith.constant 1.702000e+00 : f32
    %192 = vector.broadcast %cst_40 : f32 to vector<16x128xf32>
    %193 = arith.mulf %192, %191 : vector<16x128xf32>
    %194 = arith.negf %193 : vector<16x128xf32>
    %195 = math.exp %194 : vector<16x128xf32>
    %cst_41 = arith.constant 1.000000e+00 : f32
    %196 = vector.broadcast %cst_41 : f32 to vector<16x128xf32>
    %197 = arith.addf %196, %195 : vector<16x128xf32>
    %198 = arith.divf %196, %197 : vector<16x128xf32>
    %199 = arith.mulf %191, %198 : vector<16x128xf32>
    %c0_42 = arith.constant 0 : index
    %c0_43 = arith.constant 0 : index
    %c0_44 = arith.constant 0 : index
    %200 = vector.load %arg5[%c0_42, %c0_43, %c0_44] : memref<2x128x32xf32, #tpu.memory_space<vmem>>, vector<1x128x32xf32>
    %201 = vector.shape_cast %200 : vector<1x128x32xf32> to vector<128x32xf32>
    %cst_45 = arith.constant dense<0.000000e+00> : vector<16x32xf32>
    %202 = tpu.matmul %199, %201, %cst_45 {dimension_numbers = #tpu.dot_dimension_numbers<[1], [0], [0], [1], [0, 0, 1, 1], [], []>} : vector<16x128xf32>, vector<128x32xf32>, vector<16x32xf32> -> vector<16x32xf32>
    %203 = arith.addf %164, %202 : vector<16x32xf32>
    %204 = vector.broadcast %15 : vector<1x32xf32> to vector<16x32xf32>
    %205 = arith.addf %203, %204 : vector<16x32xf32>
    %c8 = arith.constant 8 : index
    %c0_46 = arith.constant 0 : index
    %206 = vector.load %arg2[%c8, %c0_46] : memref<32x128xf32, #tpu.memory_space<vmem>>, vector<1x32xf32>
    %c9 = arith.constant 9 : index
    %c0_47 = arith.constant 0 : index
    %207 = vector.load %arg2[%c9, %c0_47] : memref<32x128xf32, #tpu.memory_space<vmem>>, vector<1x32xf32>
    %c10 = arith.constant 10 : index
    %c0_48 = arith.constant 0 : index
    %208 = vector.load %arg2[%c10, %c0_48] : memref<32x128xf32, #tpu.memory_space<vmem>>, vector<1x32xf32>
    %c11 = arith.constant 11 : index
    %c0_49 = arith.constant 0 : index
    %209 = vector.load %arg2[%c11, %c0_49] : memref<32x128xf32, #tpu.memory_space<vmem>>, vector<1x32xf32>
    %c12 = arith.constant 12 : index
    %c0_50 = arith.constant 0 : index
    %210 = vector.load %arg2[%c12, %c0_50] : memref<32x128xf32, #tpu.memory_space<vmem>>, vector<1x32xf32>
    %c13 = arith.constant 13 : index
    %c0_51 = arith.constant 0 : index
    %211 = vector.load %arg2[%c13, %c0_51] : memref<32x128xf32, #tpu.memory_space<vmem>>, vector<1x32xf32>
    %c14 = arith.constant 14 : index
    %c0_52 = arith.constant 0 : index
    %212 = vector.load %arg2[%c14, %c0_52] : memref<32x128xf32, #tpu.memory_space<vmem>>, vector<1x96xf32>
    %c15 = arith.constant 15 : index
    %c0_53 = arith.constant 0 : index
    %213 = vector.load %arg2[%c15, %c0_53] : memref<32x128xf32, #tpu.memory_space<vmem>>, vector<1x128xf32>
    %c1_54 = arith.constant 1 : index
    %c0_55 = arith.constant 0 : index
    %c0_56 = arith.constant 0 : index
    %214 = vector.load %arg3[%c1_54, %c0_55, %c0_56] : memref<2x32x128xf32, #tpu.memory_space<vmem>>, vector<1x32x128xf32>
    %215 = vector.shape_cast %214 : vector<1x32x128xf32> to vector<32x128xf32>
    %216 = vector.extract_strided_slice %215 {offsets = [0, 0], sizes = [32, 96], strides = [1, 1]} : vector<32x128xf32> to vector<32x96xf32>
    %217 = vector.extract_strided_slice %215 {offsets = [0, 96], sizes = [32, 32], strides = [1, 1]} : vector<32x128xf32> to vector<32x32xf32>
    %cst_57 = arith.constant dense<0.000000e+00> : vector<16xf32>
    %218 = vector.multi_reduction <add>, %205, %cst_57 [1] : vector<16x32xf32> to vector<16xf32>
    %219 = vector.shape_cast %218 : vector<16xf32> to vector<16x1xf32>
    %cst_58 = arith.constant 3.200000e+01 : f32
    %220 = vector.broadcast %cst_58 : f32 to vector<16x1xf32>
    %221 = arith.divf %219, %220 : vector<16x1xf32>
    %222 = vector.broadcast %221 : vector<16x1xf32> to vector<16x32xf32>
    %223 = arith.subf %205, %222 : vector<16x32xf32>
    %224 = arith.mulf %223, %223 : vector<16x32xf32>
    %cst_59 = arith.constant dense<0.000000e+00> : vector<16xf32>
    %225 = vector.multi_reduction <add>, %224, %cst_59 [1] : vector<16x32xf32> to vector<16xf32>
    %226 = vector.shape_cast %225 : vector<16xf32> to vector<16x1xf32>
    %cst_60 = arith.constant 3.200000e+01 : f32
    %227 = vector.broadcast %cst_60 : f32 to vector<16x1xf32>
    %228 = arith.divf %226, %227 : vector<16x1xf32>
    %229 = vector.broadcast %221 : vector<16x1xf32> to vector<16x32xf32>
    %230 = arith.subf %205, %229 : vector<16x32xf32>
    %cst_61 = arith.constant 9.99999974E-6 : f32
    %231 = vector.broadcast %cst_61 : f32 to vector<16x1xf32>
    %232 = arith.addf %228, %231 : vector<16x1xf32>
    %233 = math.rsqrt %232 : vector<16x1xf32>
    %234 = vector.broadcast %233 : vector<16x1xf32> to vector<16x32xf32>
    %235 = arith.mulf %230, %234 : vector<16x32xf32>
    %236 = vector.broadcast %206 : vector<1x32xf32> to vector<16x32xf32>
    %237 = arith.mulf %235, %236 : vector<16x32xf32>
    %238 = vector.broadcast %207 : vector<1x32xf32> to vector<16x32xf32>
    %239 = arith.addf %237, %238 : vector<16x32xf32>
    %cst_62 = arith.constant dense<0.000000e+00> : vector<16x96xf32>
    %240 = tpu.matmul %239, %216, %cst_62 {dimension_numbers = #tpu.dot_dimension_numbers<[1], [0], [0], [1], [0, 0, 1, 1], [], []>} : vector<16x32xf32>, vector<32x96xf32>, vector<16x96xf32> -> vector<16x96xf32>
    %241 = vector.broadcast %212 : vector<1x96xf32> to vector<16x96xf32>
    %242 = arith.addf %240, %241 : vector<16x96xf32>
    %243 = vector.extract_strided_slice %242 {offsets = [0, 0], sizes = [16, 32], strides = [1, 1]} : vector<16x96xf32> to vector<16x32xf32>
    %cst_63 = arith.constant 0.353553385 : f32
    %244 = vector.broadcast %cst_63 : f32 to vector<16x32xf32>
    %245 = arith.mulf %243, %244 : vector<16x32xf32>
    %246 = vector.extract_strided_slice %242 {offsets = [0, 32], sizes = [16, 32], strides = [1, 1]} : vector<16x96xf32> to vector<16x32xf32>
    %247 = vector.extract_strided_slice %242 {offsets = [0, 64], sizes = [16, 32], strides = [1, 1]} : vector<16x96xf32> to vector<16x32xf32>
    %248 = vector.extract_strided_slice %245 {offsets = [0, 0], sizes = [8, 32], strides = [1, 1]} : vector<16x32xf32> to vector<8x32xf32>
    %249 = vector.extract_strided_slice %248 {offsets = [0, 0], sizes = [8, 8], strides = [1, 1]} : vector<8x32xf32> to vector<8x8xf32>
    %250 = vector.extract_strided_slice %248 {offsets = [0, 8], sizes = [8, 8], strides = [1, 1]} : vector<8x32xf32> to vector<8x8xf32>
    %251 = vector.extract_strided_slice %248 {offsets = [0, 16], sizes = [8, 8], strides = [1, 1]} : vector<8x32xf32> to vector<8x8xf32>
    %252 = vector.extract_strided_slice %248 {offsets = [0, 24], sizes = [8, 8], strides = [1, 1]} : vector<8x32xf32> to vector<8x8xf32>
    %253 = vector.shape_cast %249 : vector<8x8xf32> to vector<1x8x8xf32>
    %254 = vector.shape_cast %250 : vector<8x8xf32> to vector<1x8x8xf32>
    %255 = vector.shape_cast %251 : vector<8x8xf32> to vector<1x8x8xf32>
    %256 = vector.shape_cast %252 : vector<8x8xf32> to vector<1x8x8xf32>
    %257 = tpu.concatenate %253, %254, %255, %256 in 0 : vector<1x8x8xf32>, vector<1x8x8xf32>, vector<1x8x8xf32>, vector<1x8x8xf32> -> vector<4x8x8xf32>
    %258 = vector.extract_strided_slice %246 {offsets = [0, 0], sizes = [8, 32], strides = [1, 1]} : vector<16x32xf32> to vector<8x32xf32>
    %259 = vector.extract_strided_slice %258 {offsets = [0, 0], sizes = [8, 8], strides = [1, 1]} : vector<8x32xf32> to vector<8x8xf32>
    %260 = vector.extract_strided_slice %258 {offsets = [0, 8], sizes = [8, 8], strides = [1, 1]} : vector<8x32xf32> to vector<8x8xf32>
    %261 = vector.extract_strided_slice %258 {offsets = [0, 16], sizes = [8, 8], strides = [1, 1]} : vector<8x32xf32> to vector<8x8xf32>
    %262 = vector.extract_strided_slice %258 {offsets = [0, 24], sizes = [8, 8], strides = [1, 1]} : vector<8x32xf32> to vector<8x8xf32>
    %263 = vector.shape_cast %259 : vector<8x8xf32> to vector<1x8x8xf32>
    %264 = vector.shape_cast %260 : vector<8x8xf32> to vector<1x8x8xf32>
    %265 = vector.shape_cast %261 : vector<8x8xf32> to vector<1x8x8xf32>
    %266 = vector.shape_cast %262 : vector<8x8xf32> to vector<1x8x8xf32>
    %267 = tpu.concatenate %263, %264, %265, %266 in 0 : vector<1x8x8xf32>, vector<1x8x8xf32>, vector<1x8x8xf32>, vector<1x8x8xf32> -> vector<4x8x8xf32>
    %268 = vector.extract_strided_slice %247 {offsets = [0, 0], sizes = [8, 32], strides = [1, 1]} : vector<16x32xf32> to vector<8x32xf32>
    %269 = vector.extract_strided_slice %268 {offsets = [0, 0], sizes = [8, 8], strides = [1, 1]} : vector<8x32xf32> to vector<8x8xf32>
    %270 = vector.extract_strided_slice %268 {offsets = [0, 8], sizes = [8, 8], strides = [1, 1]} : vector<8x32xf32> to vector<8x8xf32>
    %271 = vector.extract_strided_slice %268 {offsets = [0, 16], sizes = [8, 8], strides = [1, 1]} : vector<8x32xf32> to vector<8x8xf32>
    %272 = vector.extract_strided_slice %268 {offsets = [0, 24], sizes = [8, 8], strides = [1, 1]} : vector<8x32xf32> to vector<8x8xf32>
    %273 = vector.shape_cast %269 : vector<8x8xf32> to vector<1x8x8xf32>
    %274 = vector.shape_cast %270 : vector<8x8xf32> to vector<1x8x8xf32>
    %275 = vector.shape_cast %271 : vector<8x8xf32> to vector<1x8x8xf32>
    %276 = vector.shape_cast %272 : vector<8x8xf32> to vector<1x8x8xf32>
    %277 = tpu.concatenate %273, %274, %275, %276 in 0 : vector<1x8x8xf32>, vector<1x8x8xf32>, vector<1x8x8xf32>, vector<1x8x8xf32> -> vector<4x8x8xf32>
    "tpu.trace_start"() <{level = 10 : i32, message = "hqd,hkd->hqk"}> : () -> ()
    %cst_64 = arith.constant dense<0.000000e+00> : vector<4x8x8xf32>
    %278 = tpu.matmul %257, %267, %cst_64 {dimension_numbers = #tpu.dot_dimension_numbers<[2], [2], [1], [1], [0, 0, 0, 1, 1, 1], [0], [0]>} : vector<4x8x8xf32>, vector<4x8x8xf32>, vector<4x8x8xf32> -> vector<4x8x8xf32>
    "tpu.trace_stop"() : () -> ()
    %279 = vector.shape_cast %9 : vector<8x8xf32> to vector<1x8x8xf32>
    %280 = vector.broadcast %279 : vector<1x8x8xf32> to vector<4x8x8xf32>
    %281 = arith.addf %278, %280 : vector<4x8x8xf32>
    %cst_65 = arith.constant dense<0xFF800000> : vector<4x8xf32>
    %282 = vector.multi_reduction <maximumf>, %281, %cst_65 [2] : vector<4x8x8xf32> to vector<4x8xf32>
    %283 = vector.shape_cast %282 : vector<4x8xf32> to vector<4x8x1xf32>
    %284 = vector.broadcast %283 : vector<4x8x1xf32> to vector<4x8x8xf32>
    %285 = arith.subf %281, %284 : vector<4x8x8xf32>
    %286 = math.exp %285 : vector<4x8x8xf32>
    %cst_66 = arith.constant dense<0.000000e+00> : vector<4x8xf32>
    %287 = vector.multi_reduction <add>, %286, %cst_66 [2] : vector<4x8x8xf32> to vector<4x8xf32>
    %288 = vector.shape_cast %287 : vector<4x8xf32> to vector<4x8x1xf32>
    %289 = tpu.reciprocal %288 {approx = true} : vector<4x8x1xf32> -> vector<4x8x1xf32>
    %290 = vector.broadcast %289 : vector<4x8x1xf32> to vector<4x8x8xf32>
    %291 = arith.mulf %286, %290 : vector<4x8x8xf32>
    "tpu.trace_start"() <{level = 10 : i32, message = "hqk,hkd->hqd"}> : () -> ()
    %cst_67 = arith.constant dense<0.000000e+00> : vector<4x8x8xf32>
    %292 = tpu.matmul %291, %277, %cst_67 {dimension_numbers = #tpu.dot_dimension_numbers<[2], [1], [1], [2], [0, 0, 0, 1, 1, 2], [0], [0]>} : vector<4x8x8xf32>, vector<4x8x8xf32>, vector<4x8x8xf32> -> vector<4x8x8xf32>
    "tpu.trace_stop"() : () -> ()
    %293 = vector.extract_strided_slice %292 {offsets = [0, 0, 0], sizes = [1, 8, 8], strides = [1, 1, 1]} : vector<4x8x8xf32> to vector<1x8x8xf32>
    %294 = vector.shape_cast %293 : vector<1x8x8xf32> to vector<8x8xf32>
    %295 = vector.extract_strided_slice %292 {offsets = [1, 0, 0], sizes = [1, 8, 8], strides = [1, 1, 1]} : vector<4x8x8xf32> to vector<1x8x8xf32>
    %296 = vector.shape_cast %295 : vector<1x8x8xf32> to vector<8x8xf32>
    %297 = vector.extract_strided_slice %292 {offsets = [2, 0, 0], sizes = [1, 8, 8], strides = [1, 1, 1]} : vector<4x8x8xf32> to vector<1x8x8xf32>
    %298 = vector.shape_cast %297 : vector<1x8x8xf32> to vector<8x8xf32>
    %299 = vector.extract_strided_slice %292 {offsets = [3, 0, 0], sizes = [1, 8, 8], strides = [1, 1, 1]} : vector<4x8x8xf32> to vector<1x8x8xf32>
    %300 = vector.shape_cast %299 : vector<1x8x8xf32> to vector<8x8xf32>
    %301 = tpu.concatenate %294, %296, %298, %300 in 1 : vector<8x8xf32>, vector<8x8xf32>, vector<8x8xf32>, vector<8x8xf32> -> vector<8x32xf32>
    %302 = vector.extract_strided_slice %245 {offsets = [8, 0], sizes = [8, 32], strides = [1, 1]} : vector<16x32xf32> to vector<8x32xf32>
    %303 = vector.extract_strided_slice %302 {offsets = [0, 0], sizes = [8, 8], strides = [1, 1]} : vector<8x32xf32> to vector<8x8xf32>
    %304 = vector.extract_strided_slice %302 {offsets = [0, 8], sizes = [8, 8], strides = [1, 1]} : vector<8x32xf32> to vector<8x8xf32>
    %305 = vector.extract_strided_slice %302 {offsets = [0, 16], sizes = [8, 8], strides = [1, 1]} : vector<8x32xf32> to vector<8x8xf32>
    %306 = vector.extract_strided_slice %302 {offsets = [0, 24], sizes = [8, 8], strides = [1, 1]} : vector<8x32xf32> to vector<8x8xf32>
    %307 = vector.shape_cast %303 : vector<8x8xf32> to vector<1x8x8xf32>
    %308 = vector.shape_cast %304 : vector<8x8xf32> to vector<1x8x8xf32>
    %309 = vector.shape_cast %305 : vector<8x8xf32> to vector<1x8x8xf32>
    %310 = vector.shape_cast %306 : vector<8x8xf32> to vector<1x8x8xf32>
    %311 = tpu.concatenate %307, %308, %309, %310 in 0 : vector<1x8x8xf32>, vector<1x8x8xf32>, vector<1x8x8xf32>, vector<1x8x8xf32> -> vector<4x8x8xf32>
    %312 = vector.extract_strided_slice %246 {offsets = [8, 0], sizes = [8, 32], strides = [1, 1]} : vector<16x32xf32> to vector<8x32xf32>
    %313 = vector.extract_strided_slice %312 {offsets = [0, 0], sizes = [8, 8], strides = [1, 1]} : vector<8x32xf32> to vector<8x8xf32>
    %314 = vector.extract_strided_slice %312 {offsets = [0, 8], sizes = [8, 8], strides = [1, 1]} : vector<8x32xf32> to vector<8x8xf32>
    %315 = vector.extract_strided_slice %312 {offsets = [0, 16], sizes = [8, 8], strides = [1, 1]} : vector<8x32xf32> to vector<8x8xf32>
    %316 = vector.extract_strided_slice %312 {offsets = [0, 24], sizes = [8, 8], strides = [1, 1]} : vector<8x32xf32> to vector<8x8xf32>
    %317 = vector.shape_cast %313 : vector<8x8xf32> to vector<1x8x8xf32>
    %318 = vector.shape_cast %314 : vector<8x8xf32> to vector<1x8x8xf32>
    %319 = vector.shape_cast %315 : vector<8x8xf32> to vector<1x8x8xf32>
    %320 = vector.shape_cast %316 : vector<8x8xf32> to vector<1x8x8xf32>
    %321 = tpu.concatenate %317, %318, %319, %320 in 0 : vector<1x8x8xf32>, vector<1x8x8xf32>, vector<1x8x8xf32>, vector<1x8x8xf32> -> vector<4x8x8xf32>
    %322 = vector.extract_strided_slice %247 {offsets = [8, 0], sizes = [8, 32], strides = [1, 1]} : vector<16x32xf32> to vector<8x32xf32>
    %323 = vector.extract_strided_slice %322 {offsets = [0, 0], sizes = [8, 8], strides = [1, 1]} : vector<8x32xf32> to vector<8x8xf32>
    %324 = vector.extract_strided_slice %322 {offsets = [0, 8], sizes = [8, 8], strides = [1, 1]} : vector<8x32xf32> to vector<8x8xf32>
    %325 = vector.extract_strided_slice %322 {offsets = [0, 16], sizes = [8, 8], strides = [1, 1]} : vector<8x32xf32> to vector<8x8xf32>
    %326 = vector.extract_strided_slice %322 {offsets = [0, 24], sizes = [8, 8], strides = [1, 1]} : vector<8x32xf32> to vector<8x8xf32>
    %327 = vector.shape_cast %323 : vector<8x8xf32> to vector<1x8x8xf32>
    %328 = vector.shape_cast %324 : vector<8x8xf32> to vector<1x8x8xf32>
    %329 = vector.shape_cast %325 : vector<8x8xf32> to vector<1x8x8xf32>
    %330 = vector.shape_cast %326 : vector<8x8xf32> to vector<1x8x8xf32>
    %331 = tpu.concatenate %327, %328, %329, %330 in 0 : vector<1x8x8xf32>, vector<1x8x8xf32>, vector<1x8x8xf32>, vector<1x8x8xf32> -> vector<4x8x8xf32>
    "tpu.trace_start"() <{level = 10 : i32, message = "hqd,hkd->hqk"}> : () -> ()
    %cst_68 = arith.constant dense<0.000000e+00> : vector<4x8x8xf32>
    %332 = tpu.matmul %311, %321, %cst_68 {dimension_numbers = #tpu.dot_dimension_numbers<[2], [2], [1], [1], [0, 0, 0, 1, 1, 1], [0], [0]>} : vector<4x8x8xf32>, vector<4x8x8xf32>, vector<4x8x8xf32> -> vector<4x8x8xf32>
    "tpu.trace_stop"() : () -> ()
    %333 = vector.shape_cast %9 : vector<8x8xf32> to vector<1x8x8xf32>
    %334 = vector.broadcast %333 : vector<1x8x8xf32> to vector<4x8x8xf32>
    %335 = arith.addf %332, %334 : vector<4x8x8xf32>
    %cst_69 = arith.constant dense<0xFF800000> : vector<4x8xf32>
    %336 = vector.multi_reduction <maximumf>, %335, %cst_69 [2] : vector<4x8x8xf32> to vector<4x8xf32>
    %337 = vector.shape_cast %336 : vector<4x8xf32> to vector<4x8x1xf32>
    %338 = vector.broadcast %337 : vector<4x8x1xf32> to vector<4x8x8xf32>
    %339 = arith.subf %335, %338 : vector<4x8x8xf32>
    %340 = math.exp %339 : vector<4x8x8xf32>
    %cst_70 = arith.constant dense<0.000000e+00> : vector<4x8xf32>
    %341 = vector.multi_reduction <add>, %340, %cst_70 [2] : vector<4x8x8xf32> to vector<4x8xf32>
    %342 = vector.shape_cast %341 : vector<4x8xf32> to vector<4x8x1xf32>
    %343 = tpu.reciprocal %342 {approx = true} : vector<4x8x1xf32> -> vector<4x8x1xf32>
    %344 = vector.broadcast %343 : vector<4x8x1xf32> to vector<4x8x8xf32>
    %345 = arith.mulf %340, %344 : vector<4x8x8xf32>
    "tpu.trace_start"() <{level = 10 : i32, message = "hqk,hkd->hqd"}> : () -> ()
    %cst_71 = arith.constant dense<0.000000e+00> : vector<4x8x8xf32>
    %346 = tpu.matmul %345, %331, %cst_71 {dimension_numbers = #tpu.dot_dimension_numbers<[2], [1], [1], [2], [0, 0, 0, 1, 1, 2], [0], [0]>} : vector<4x8x8xf32>, vector<4x8x8xf32>, vector<4x8x8xf32> -> vector<4x8x8xf32>
    "tpu.trace_stop"() : () -> ()
    %347 = vector.extract_strided_slice %346 {offsets = [0, 0, 0], sizes = [1, 8, 8], strides = [1, 1, 1]} : vector<4x8x8xf32> to vector<1x8x8xf32>
    %348 = vector.shape_cast %347 : vector<1x8x8xf32> to vector<8x8xf32>
    %349 = vector.extract_strided_slice %346 {offsets = [1, 0, 0], sizes = [1, 8, 8], strides = [1, 1, 1]} : vector<4x8x8xf32> to vector<1x8x8xf32>
    %350 = vector.shape_cast %349 : vector<1x8x8xf32> to vector<8x8xf32>
    %351 = vector.extract_strided_slice %346 {offsets = [2, 0, 0], sizes = [1, 8, 8], strides = [1, 1, 1]} : vector<4x8x8xf32> to vector<1x8x8xf32>
    %352 = vector.shape_cast %351 : vector<1x8x8xf32> to vector<8x8xf32>
    %353 = vector.extract_strided_slice %346 {offsets = [3, 0, 0], sizes = [1, 8, 8], strides = [1, 1, 1]} : vector<4x8x8xf32> to vector<1x8x8xf32>
    %354 = vector.shape_cast %353 : vector<1x8x8xf32> to vector<8x8xf32>
    %355 = tpu.concatenate %348, %350, %352, %354 in 1 : vector<8x8xf32>, vector<8x8xf32>, vector<8x8xf32>, vector<8x8xf32> -> vector<8x32xf32>
    %356 = tpu.concatenate %301, %355 in 0 : vector<8x32xf32>, vector<8x32xf32> -> vector<16x32xf32>
    %cst_72 = arith.constant dense<0.000000e+00> : vector<16x32xf32>
    %357 = tpu.matmul %356, %217, %cst_72 {dimension_numbers = #tpu.dot_dimension_numbers<[1], [0], [0], [1], [0, 0, 1, 1], [], []>} : vector<16x32xf32>, vector<32x32xf32>, vector<16x32xf32> -> vector<16x32xf32>
    %358 = arith.addf %205, %357 : vector<16x32xf32>
    %359 = vector.broadcast %208 : vector<1x32xf32> to vector<16x32xf32>
    %360 = arith.addf %358, %359 : vector<16x32xf32>
    %cst_73 = arith.constant dense<0.000000e+00> : vector<16xf32>
    %361 = vector.multi_reduction <add>, %360, %cst_73 [1] : vector<16x32xf32> to vector<16xf32>
    %362 = vector.shape_cast %361 : vector<16xf32> to vector<16x1xf32>
    %cst_74 = arith.constant 3.200000e+01 : f32
    %363 = vector.broadcast %cst_74 : f32 to vector<16x1xf32>
    %364 = arith.divf %362, %363 : vector<16x1xf32>
    %365 = vector.broadcast %364 : vector<16x1xf32> to vector<16x32xf32>
    %366 = arith.subf %360, %365 : vector<16x32xf32>
    %367 = arith.mulf %366, %366 : vector<16x32xf32>
    %cst_75 = arith.constant dense<0.000000e+00> : vector<16xf32>
    %368 = vector.multi_reduction <add>, %367, %cst_75 [1] : vector<16x32xf32> to vector<16xf32>
    %369 = vector.shape_cast %368 : vector<16xf32> to vector<16x1xf32>
    %cst_76 = arith.constant 3.200000e+01 : f32
    %370 = vector.broadcast %cst_76 : f32 to vector<16x1xf32>
    %371 = arith.divf %369, %370 : vector<16x1xf32>
    %372 = vector.broadcast %364 : vector<16x1xf32> to vector<16x32xf32>
    %373 = arith.subf %360, %372 : vector<16x32xf32>
    %cst_77 = arith.constant 9.99999974E-6 : f32
    %374 = vector.broadcast %cst_77 : f32 to vector<16x1xf32>
    %375 = arith.addf %371, %374 : vector<16x1xf32>
    %376 = math.rsqrt %375 : vector<16x1xf32>
    %377 = vector.broadcast %376 : vector<16x1xf32> to vector<16x32xf32>
    %378 = arith.mulf %373, %377 : vector<16x32xf32>
    %379 = vector.broadcast %209 : vector<1x32xf32> to vector<16x32xf32>
    %380 = arith.mulf %378, %379 : vector<16x32xf32>
    %381 = vector.broadcast %210 : vector<1x32xf32> to vector<16x32xf32>
    %382 = arith.addf %380, %381 : vector<16x32xf32>
    %c1_78 = arith.constant 1 : index
    %c0_79 = arith.constant 0 : index
    %c0_80 = arith.constant 0 : index
    %383 = vector.load %arg4[%c1_78, %c0_79, %c0_80] : memref<2x32x128xf32, #tpu.memory_space<vmem>>, vector<1x32x128xf32>
    %384 = vector.shape_cast %383 : vector<1x32x128xf32> to vector<32x128xf32>
    %cst_81 = arith.constant dense<0.000000e+00> : vector<16x128xf32>
    %385 = tpu.matmul %382, %384, %cst_81 {dimension_numbers = #tpu.dot_dimension_numbers<[1], [0], [0], [1], [0, 0, 1, 1], [], []>} : vector<16x32xf32>, vector<32x128xf32>, vector<16x128xf32> -> vector<16x128xf32>
    %386 = vector.broadcast %213 : vector<1x128xf32> to vector<16x128xf32>
    %387 = arith.addf %385, %386 : vector<16x128xf32>
    %cst_82 = arith.constant 1.702000e+00 : f32
    %388 = vector.broadcast %cst_82 : f32 to vector<16x128xf32>
    %389 = arith.mulf %388, %387 : vector<16x128xf32>
    %390 = arith.negf %389 : vector<16x128xf32>
    %391 = math.exp %390 : vector<16x128xf32>
    %cst_83 = arith.constant 1.000000e+00 : f32
    %392 = vector.broadcast %cst_83 : f32 to vector<16x128xf32>
    %393 = arith.addf %392, %391 : vector<16x128xf32>
    %394 = arith.divf %392, %393 : vector<16x128xf32>
    %395 = arith.mulf %387, %394 : vector<16x128xf32>
    %c1_84 = arith.constant 1 : index
    %c0_85 = arith.constant 0 : index
    %c0_86 = arith.constant 0 : index
    %396 = vector.load %arg5[%c1_84, %c0_85, %c0_86] : memref<2x128x32xf32, #tpu.memory_space<vmem>>, vector<1x128x32xf32>
    %397 = vector.shape_cast %396 : vector<1x128x32xf32> to vector<128x32xf32>
    %cst_87 = arith.constant dense<0.000000e+00> : vector<16x32xf32>
    %398 = tpu.matmul %395, %397, %cst_87 {dimension_numbers = #tpu.dot_dimension_numbers<[1], [0], [0], [1], [0, 0, 1, 1], [], []>} : vector<16x128xf32>, vector<128x32xf32>, vector<16x32xf32> -> vector<16x32xf32>
    %399 = arith.addf %360, %398 : vector<16x32xf32>
    %400 = vector.broadcast %211 : vector<1x32xf32> to vector<16x32xf32>
    %401 = arith.addf %399, %400 : vector<16x32xf32>
    %402 = tpu.iota {dimensions = array<i32: 1>} : vector<1x16xi32>
    %c0_88 = arith.constant 0 : index
    %403 = memref.load %arg1[%c0_88] : memref<2xi32, #tpu.memory_space<smem>>
    %c0_i32 = arith.constant 0 : i32
    %404 = arith.addi %c0_i32, %403 : i32
    %405 = vector.broadcast %404 : i32 to vector<1x16xi32>
    %406 = arith.cmpi eq, %402, %405 : vector<1x16xi32>
    %407 = arith.extui %406 : vector<1x16xi1> to vector<1x16xi32>
    %408 = arith.sitofp %407 : vector<1x16xi32> to vector<1x16xf32>
    %c1_89 = arith.constant 1 : index
    %409 = memref.load %arg1[%c1_89] : memref<2xi32, #tpu.memory_space<smem>>
    %c8_i32 = arith.constant 8 : i32
    %410 = arith.addi %c8_i32, %409 : i32
    %411 = vector.broadcast %410 : i32 to vector<1x16xi32>
    %412 = arith.cmpi eq, %402, %411 : vector<1x16xi32>
    %413 = arith.extui %412 : vector<1x16xi1> to vector<1x16xi32>
    %414 = arith.sitofp %413 : vector<1x16xi32> to vector<1x16xf32>
    %415 = tpu.concatenate %408, %414 in 0 : vector<1x16xf32>, vector<1x16xf32> -> vector<2x16xf32>
    %cst_90 = arith.constant dense<0.000000e+00> : vector<2x32xf32>
    %416 = tpu.matmul %415, %401, %cst_90 {dimension_numbers = #tpu.dot_dimension_numbers<[1], [0], [0], [1], [0, 0, 1, 1], [], []>} : vector<2x16xf32>, vector<16x32xf32>, vector<2x32xf32> -> vector<2x32xf32>
    %c16 = arith.constant 16 : index
    %c0_91 = arith.constant 0 : index
    %417 = vector.load %arg2[%c16, %c0_91] : memref<32x128xf32, #tpu.memory_space<vmem>>, vector<1x32xf32>
    %c17 = arith.constant 17 : index
    %c0_92 = arith.constant 0 : index
    %418 = vector.load %arg2[%c17, %c0_92] : memref<32x128xf32, #tpu.memory_space<vmem>>, vector<1x32xf32>
    %cst_93 = arith.constant dense<0.000000e+00> : vector<2xf32>
    %419 = vector.multi_reduction <add>, %416, %cst_93 [1] : vector<2x32xf32> to vector<2xf32>
    %420 = vector.shape_cast %419 : vector<2xf32> to vector<2x1xf32>
    %cst_94 = arith.constant 3.200000e+01 : f32
    %421 = vector.broadcast %cst_94 : f32 to vector<2x1xf32>
    %422 = arith.divf %420, %421 : vector<2x1xf32>
    %423 = vector.broadcast %422 : vector<2x1xf32> to vector<2x32xf32>
    %424 = arith.subf %416, %423 : vector<2x32xf32>
    %425 = arith.mulf %424, %424 : vector<2x32xf32>
    %cst_95 = arith.constant dense<0.000000e+00> : vector<2xf32>
    %426 = vector.multi_reduction <add>, %425, %cst_95 [1] : vector<2x32xf32> to vector<2xf32>
    %427 = vector.shape_cast %426 : vector<2xf32> to vector<2x1xf32>
    %cst_96 = arith.constant 3.200000e+01 : f32
    %428 = vector.broadcast %cst_96 : f32 to vector<2x1xf32>
    %429 = arith.divf %427, %428 : vector<2x1xf32>
    %430 = vector.broadcast %422 : vector<2x1xf32> to vector<2x32xf32>
    %431 = arith.subf %416, %430 : vector<2x32xf32>
    %cst_97 = arith.constant 9.99999974E-6 : f32
    %432 = vector.broadcast %cst_97 : f32 to vector<2x1xf32>
    %433 = arith.addf %429, %432 : vector<2x1xf32>
    %434 = math.rsqrt %433 : vector<2x1xf32>
    %435 = vector.broadcast %434 : vector<2x1xf32> to vector<2x32xf32>
    %436 = arith.mulf %431, %435 : vector<2x32xf32>
    %437 = vector.broadcast %417 : vector<1x32xf32> to vector<2x32xf32>
    %438 = arith.mulf %436, %437 : vector<2x32xf32>
    %439 = vector.broadcast %418 : vector<1x32xf32> to vector<2x32xf32>
    %440 = arith.addf %438, %439 : vector<2x32xf32>
    %c0_98 = arith.constant 0 : index
    %c0_99 = arith.constant 0 : index
    %441 = vector.load %arg6[%c0_98, %c0_99] : memref<32x128xf32, #tpu.memory_space<vmem>>, vector<32x128xf32>
    %cst_100 = arith.constant dense<0.000000e+00> : vector<2x128xf32>
    %442 = tpu.matmul %440, %441, %cst_100 {dimension_numbers = #tpu.dot_dimension_numbers<[1], [0], [0], [1], [0, 0, 1, 1], [], []>} : vector<2x32xf32>, vector<32x128xf32>, vector<2x128xf32> -> vector<2x128xf32>
    %c0_101 = arith.constant 0 : index
    %c0_102 = arith.constant 0 : index
    %443 = vector.load %arg7[%c0_101, %c0_102] : memref<2x128xf32, #tpu.memory_space<vmem>>, vector<2x128xf32>
    tpu.vector_store %arg7[%c0_101, %c0_102], %442 {strides = array<i32>} : memref<2x128xf32, #tpu.memory_space<vmem>>, vector<2x128xf32>,
    return
  }
}

</mosaic_0001>

<bundles_post_ra>
// kernel: tpu_custom_call.1
= control target key start
LH: loop header
LB: loop body
LE: loop exit
PB: predicated region body
PF: predicated region fallthrough
CT: control target
= control target key end

     0   :  { %12 = vsyncpa [#allocation4], 0  ;;  %s5585_s0 = inlined_call_operand.vmem [shape: f32[16,32], index: 0, kind: input, shape index: {}]   ;;  %s5586_s1 = inlined_call_operand.vmem [shape: s32[2], index: 1, kind: input, shape index: {}]   ;;  %s5587_s2 = inlined_call_operand.vmem [shape: f32[32,128], index: 2, kind: input, shape index: {}]   ;;  %s5588_s3 = inlined_call_operand.vmem [shape: f32[2,32,128], index: 3, kind: input, shape index: {}]   ;;  %s5589_s4 = inlined_call_operand.vmem [shape: f32[2,32,128], index: 4, kind: input, shape index: {}]   ;;  %s5590_s5 = inlined_call_operand.vmem [shape: f32[2,128,32], index: 5, kind: input, shape index: {}]   ;;  %s5591_s6 = inlined_call_operand.vmem [shape: f32[32,128], index: 6, kind: input, shape index: {}]   ;;  %s5592_s7 = inlined_call_operand.hbm [shape: f32[2,128], index: 7, kind: output, shape index: {}]  }
   0x1   :  { %13 = vsyncpa [#allocation3], 0  ;;  %s22_s26 = sshll.u32 %s5586_s1, 4  ;;  %s23_s26 = int_to_ptr.vmem [resolvable:$true] %s22_s26 }
   0x2   :  { %s4779_s27 = scalar_lea.vmem %s23_s26, 16  ;;  %p4784_p1 = scmp.lt.s32.totalorder %s23_s26, %s23_s26 }
   0x3   :  { %p4780_p0 = scmp.ne.s32.totalorder %s23_s26, %s4779_s27  ;;  %p4785_p2 = scmp.lt.s32.totalorder %s4779_s27, %s4779_s27 }
   0x5   :  { %p4786_p3 = por %p4785_p2, %p4784_p1 }
   0x7   :  { %p4787_p4 = pnand %p4786_p3, %p4780_p0 }
   0x9   :  { %4790 = shalt.err (!%p4787_p4)
}
   0xa   :  { %s4817_s28 = smov [#allocation2]  }
   0xb   :  { %25 = dma.vmem_to_smem %s23_s26, 16, %s4817_s28, [#allocation4]  }
   0xc   :  { %4813 = dma.done.wait [#allocation4], 16  }
   0xd   :  { %4814 = vsyncadd [#allocation4], 4294967280 }
   0xe   :  { %39 = sfence }
   0xf   :  { %v40_v0 = vld [vmem:[%s5587_s2 + $0x12] sm:$0xff]  ;;  %v41_v1 = vld [vmem:[%s5585_s0] sm:$0xff]  ;;  %vm63_vm0 = vcmask 261120   ;;  %v42_v2 = vld [vmem:[%s5585_s0 + $0x8] sm:$0xff]  ;;  %v4818_v40 = vmov 0.0   ;;  %vm4819_vm1 = vmmov 0   ;;  %v45_v57 = vlaneseq }
  0x10   :  { %v4884_v3 = vadd.f32 %v41_v1, %v40_v0  ;;  %v4886_v4 = vadd.f32 %v42_v2, %v40_v0  ;;  %v4899_v17 = vld [vmem:[%s5588_s3] sm:$0xff]  ;;  %v4904_v18 = vld [vmem:[%s5588_s3 + $0x8] sm:$0xff]  ;;  %v4909_v19 = vld [vmem:[%s5588_s3 + $0x10] sm:$0xff]  ;;  %4232 = vmatprep.subr.mxu0 %v4818_v40  ;;  %4234 = vmatprep.mubr.msk.f32.mxu0 %vm4819_vm1, %v4818_v40  ;;  %s4820_s24 = smov 112   ;;  %s4821_s25 = smov 120   ;;  %vm206_vm2 = vcmask 64512  }
  0x11   :  { %v4661_v20 = vpack.i.bf16 %v4904_v18, %v4899_v17  ;;  %v4525_v21 = vpack.c.bf16 %v4904_v18, %v4899_v17  ;;  %v4918_v22 = vld [vmem:[%s5588_s3 + $0x18] sm:$0xff]  ;;  %v3956_v31 = vld [vmem:[%s5587_s2] ss:$0 sm:$0xff]  ;;  %v3957_v33 = vld [vmem:[%s5587_s2 + $0x1] ss:$0 sm:$0xff]  ;;  %s4822_s26 = smov 104  }
  0x12   :  { %v64_v5 = vsel %vm63_vm0, %v4884_v3, 0.0  ;;  %v67_v6 = vsel %vm63_vm0, %v4886_v4, 0.0  ;;  %v4529_v23 = vpack.c.bf16 %v4918_v22, %v4909_v19  ;;  %v3958_v41 = vld [vmem:[%s5587_s2 + $0x6] ss:$0 sm:$0xff]  ;;  %s4823_s27 = smov 96   ;;  %v46_v58 = vshrl.u32 %v45_v57, 7 }
  0x13   :  { %65 = vadd.xlane.f32.xlu0 %v64_v5  ;;  %4526 = vmatprep.subr.bf16.mxu1 %v4525_v21  ;;  %v4981_v59 = vand.u32 127, %v45_v57  ;;  %v4824_v60 = vmov -1e+30   ;;  %s4825_s28 = smov 64   ;;  %s4826_s29 = smov 32   ;;  %vm870_vm4 = vcmask 130048  }
  0x14   :  { %4528 = vmatpush3.bf16.msra.mxu1 %v4525_v21  ;;  %s4827_s30 = smov 16   ;;  %s4828_s8 = smov 8   ;;  %vm872_vm5 = vcmask 195584   ;;  %vm3762_vm8 = vcmask 1040384   ;;  %vm3839_vm9 = vcmask 254976  }
  0x15   :  { %4530 = vmatprep.subr.bf16.mxu1 %v4529_v23  ;;  %vm49_vm3 = vcmp.le.s32.totalorder %v4981_v59, %v46_v58  ;;  %s4829_s9 = smov 24  }
  0x16   :  { %v4984_v61 = vsel %vm49_vm3, 0.0, %v4824_v60 }
  0x17   :  { %68 = vadd.xlane.f32.xlu0 %v67_v6 }
  0x18   :  { %4532 = vmatpush3.bf16.msra.mxu1 %v4529_v23 }
  0x19   :  { %4222 = vmatprep.subr.mxu1 %v4818_v40 }
  0xa0   :  { %v66_v7 = vpop.xlane.xlu0 %65 }
  0xa1   :  { %v71_v8 = vmul.f32 0.03125, %v66_v7 }
  0xa3   :  { %v73_v9 = vsub.f32 %v4884_v3, %v71_v8 }
  0xa4   :  { %v69_v10 = vpop.xlane.xlu0 %68 }
  0xa5   :  { %v72_v11 = vmul.f32 0.03125, %v69_v10  ;;  %v75_v12 = vmul.f32 %v73_v9, %v73_v9 }
  0xa7   :  { %v74_v13 = vsub.f32 %v4886_v4, %v72_v11  ;;  %v77_v14 = vsel %vm63_vm0, %v75_v12, 0.0 }
  0xa8   :  { %78 = vadd.xlane.f32.xlu1 %v77_v14 }
  0xa9   :  { %v76_v15 = vmul.f32 %v74_v13, %v74_v13 }
  0xab   :  { %v80_v16 = vsel %vm63_vm0, %v76_v15, 0.0 }
  0xac   :  { %81 = vadd.xlane.f32.xlu1 %v80_v16 }
 0x135   :  { %v79_v24 = vpop.xlane.xlu1 %78 }
 0x136   :  { %v83_v25 = vmul.f32 0.03125, %v79_v24 }
 0x138   :  { %v85_v26 = vadd.f32 1e-05, %v83_v25 }
 0x139   :  { %v82_v27 = vpop.xlane.xlu1 %81 }
 0x13a   :  { %4681 = vrsqrt.f32 %v85_v26  ;;  %v84_v28 = vmul.f32 0.03125, %v82_v27 }
 0x13c   :  { %v86_v29 = vadd.f32 1e-05, %v84_v28 }
 0x13e   :  { %4683 = vrsqrt.f32 %v86_v29 }
 0x144   :  { %v4682_v30 = vpop.eup %4681 }
 0x145   :  { %v89_v32 = vmul.f32 %v4682_v30, %v73_v9 }
 0x147   :  { %v95_v34 = vmul.f32 %v3956_v31, %v89_v32 }
 0x148   :  { %v4684_v35 = vpop.eup %4683 }
 0x149   :  { %v90_v36 = vmul.f32 %v4684_v35, %v74_v13  ;;  %v101_v37 = vadd.f32 %v3957_v33, %v95_v34 }
 0x14b   :  { %v96_v38 = vmul.f32 %v3956_v31, %v90_v36  ;;  %4219 = vmatprep.mubr.msk.f32.mxu1 %vm63_vm0, %v101_v37 }
 0x14d   :  { %v102_v39 = vadd.f32 %v3957_v33, %v96_v38 }
 0x14f   :  { %4220 = vmatmul.mubr.msk.f32.vlgmr.msra.gmra.mrb[0].mxu1 %vm63_vm0, %v102_v39 }
 0x150   :  { %4224 = vmatprep.mubr.msk.f32.mxu1 %vm4819_vm1, %v4818_v40 }
 0x222   :  { %v4221_v42 = vpop.f32.mrb[0].mxu1 }
 0x223   :  { %v4935_v43 = vadd.f32 %v4221_v42, %v3958_v41  ;;  %v179_v44 = vpop.f32.mrb[1].mxu1 }
 0x224   :  { %v4941_v45 = vadd.f32 %v3958_v41, %v179_v44 }
 0x225   :  { %v5010_v26 = vmul.f32 0.35355338, %v4935_v43 }
 0x226   :  { %200 = vrot.lane.b32.xlu1 %v4941_v45, %s4820_s24  ;;  %198 = vrot.lane.b32.xlu0 %v4941_v45, %s4821_s25  ;;  %v188_v46 = vmul.f32 0.35355338, %v4941_v45 }
 0x22a   :  { %202 = vrot.lane.b32.xlu1 %v4941_v45, %s4822_s26 }
 0x22e   :  { %204 = vrot.lane.b32.xlu1 %v4941_v45, %s4823_s27 }
 0x232   :  { %191 = vrot.lane.b32.xlu1 %v188_v46, %s4821_s25 }
 0x298   :  { %v201_v47 = vpop.permute.xlu1 %200  ;;  %v4953_v48 = vpop.permute.xlu0 %198 }
 0x299   :  { %281 = vrot.lane.b32.xlu0 %v4953_v48, %s4823_s27 }
 0x29c   :  { %v203_v49 = vpop.permute.xlu1 %202 }
 0x29d   :  { %357 = vrot.lane.b32.xlu0 %v201_v47, %s4823_s27  ;;  %433 = vrot.lane.b32.xlu1 %v203_v49, %s4823_s27 }
 0x2a0   :  { %v205_v50 = vpop.permute.xlu1 %204 }
 0x2a1   :  { %4223 = vmatpush3.xpose.msk.msra.mxu1 %vm206_vm2, %v205_v50  ;;  %193 = vrot.lane.b32.xlu0 %v188_v46, %s4820_s24 }
 0x2a2   :  { %195 = vrot.lane.b32.xlu1 %v188_v46, %s4822_s26  ;;  %4227 = vmatprep.subr.mxu1 %v4818_v40 }
 0x2a4   :  { %4225 = vmatmul.mubr.msk.f32.vlgmr.msra.gmra.mrb[2].mxu1 %vm206_vm2, %v188_v46  ;;  %v192_v51 = vpop.permute.xlu1 %191 }
 0x2a5   :  { %4229 = vmatprep.mubr.msk.f32.mxu1 %vm4819_vm1, %v4818_v40 }
 0x30b   :  { %v282_v52 = vpop.permute.xlu0 %281 }
 0x30c   :  { %4228 = vmatpush3.xpose.msk.msra.mxu1 %vm206_vm2, %v282_v52 }
 0x30d   :  { %4237 = vmatprep.subr.mxu1 %v4818_v40 }
 0x30f   :  { %v358_v53 = vpop.permute.xlu0 %357  ;;  %v434_v54 = vpop.permute.xlu1 %433  ;;  %4230 = vmatmul.mubr.msk.f32.vlgmr.msra.gmra.mrb[4].mxu1 %vm206_vm2, %v192_v51 }
 0x310   :  { %4233 = vmatpush3.xpose.msk.msra.mxu0 %vm206_vm2, %v358_v53  ;;  %4238 = vmatpush3.xpose.msk.msra.mxu1 %vm206_vm2, %v434_v54 }
 0x311   :  { %4239 = vmatprep.mubr.msk.f32.mxu1 %vm4819_vm1, %v4818_v40  ;;  %4242 = vmatprep.subr.mxu0 %v4818_v40 }
 0x312   :  { %4247 = vmatprep.subr.mxu1 %v4818_v40 }
 0x313   :  { %v194_v55 = vpop.permute.xlu0 %193 }
 0x314   :  { %v196_v56 = vpop.permute.xlu1 %195  ;;  %4235 = vmatmul.mubr.msk.f32.vlgmr.msra.gmra.mrb[0].mxu0 %vm206_vm2, %v194_v55 }
 0x315   :  { %4240 = vmatmul.mubr.msk.f32.vlgmr.msra.gmra.mrb[6].mxu1 %vm206_vm2, %v196_v56  ;;  %4244 = vmatprep.mubr.msk.f32.mxu0 %vm4819_vm1, %v4818_v40 }
 0x316   :  { %4249 = vmatprep.mubr.msk.f32.mxu1 %vm4819_vm1, %v4818_v40 }
 0x377   :  { %v277_v62 = vpop.f32.mrb[2].mxu1 }
 0x378   :  { %v278_v63 = vadd.f32 %v277_v62, %v4984_v61  ;;  %v4226_v0 = vpop.f32.mrb[3].mxu1 }
 0x37a   :  { %v509_v1 = vsel %vm206_vm2, %v278_v63, -inf }
 0x37b   :  { %510 = vmax.xlane.f32.xlu0 %v509_v1 }
 0x3e2   :  { %v353_v2 = vpop.f32.mrb[4].mxu1 }
 0x3e3   :  { %v354_v5 = vadd.f32 %v353_v2, %v4984_v61  ;;  %v4231_v6 = vpop.f32.mrb[5].mxu1 }
 0x3e5   :  { %v512_v7 = vsel %vm206_vm2, %v354_v5, -inf }
 0x3e6   :  { %513 = vmax.xlane.f32.xlu1 %v512_v7 }
 0x3e7   :  { %v429_v8 = vpop.f32.mrb[0].mxu0 }
 0x3e8   :  { %v430_v9 = vadd.f32 %v429_v8, %v4984_v61  ;;  %v505_v10 = vpop.f32.mrb[6].mxu1  ;;  %v4236_v11 = vpop.f32.mrb[1].mxu0 }
 0x3e9   :  { %v4241_v12 = vpop.f32.mrb[7].mxu1  ;;  %v506_v13 = vadd.f32 %v505_v10, %v4984_v61 }
 0x3ea   :  { %v515_v14 = vsel %vm206_vm2, %v430_v9, -inf }
 0x3eb   :  { %516 = vmax.xlane.f32.xlu0 %v515_v14  ;;  %v518_v15 = vsel %vm206_vm2, %v506_v13, -inf }
 0x3ef   :  { %519 = vmax.xlane.f32.xlu0 %v518_v15 }
 0x3f7   :  { %884 = vrot.lane.b32.xlu1 %v4935_v43, %s4820_s24 }
 0x3fb   :  { %886 = vrot.lane.b32.xlu1 %v4935_v43, %s4822_s26 }
 0x3ff   :  { %553 = vrot.lane.b32.xlu1 %v4941_v45, %s4825_s28 }
 0x403   :  { %705 = vrot.lane.b32.xlu1 %v201_v47, %s4825_s28 }
 0x405   :  { %882 = vrot.lane.b32.xlu0 %v4935_v43, %s4821_s25 }
 0x407   :  { %781 = vrot.lane.b32.xlu1 %v203_v49, %s4825_s28 }
 0x408   :  { %v511_v16 = vpop.xlane.xlu0 %510 }
 0x409   :  { %629 = vrot.lane.b32.xlu0 %v4953_v48, %s4825_s28  ;;  %v521_v21 = vsub.f32 %v278_v63, %v511_v16 }
 0x40b   :  { %888 = vrot.lane.b32.xlu1 %v4935_v43, %s4823_s27  ;;  %v525_v23 = vmul.f32 1.442695, %v521_v21 }
 0x40d   :  { %4685 = vpow2.f32 %v525_v23 }
 0x417   :  { %v4686_v24 = vpop.eup %4685 }
 0x418   :  { %v533_v25 = vsel %vm206_vm2, %v4686_v24, 0.0 }
 0x42f   :  { %534 = vadd.xlane.f32.xlu1 %v533_v25 }
 0x440   :  { %875 = vrot.lane.b32.xlu1 %v5010_v26, %s4821_s25 }
 0x473   :  { %v514_v27 = vpop.xlane.xlu1 %513 }
 0x474   :  { %v522_v35 = vsub.f32 %v354_v5, %v514_v27 }
 0x476   :  { %v527_v36 = vmul.f32 1.442695, %v522_v35 }
 0x477   :  { %v5014_v28 = vpop.permute.xlu1 %884 }
 0x478   :  { %v517_v29 = vpop.xlane.xlu0 %516  ;;  %4687 = vpow2.f32 %v527_v36 }
 0x479   :  { %v523_v37 = vsub.f32 %v430_v9, %v517_v29 }
 0x47b   :  { %v5016_v30 = vpop.permute.xlu1 %886  ;;  %v529_v38 = vmul.f32 1.442695, %v523_v37 }
 0x47c   :  { %1116 = vrot.lane.b32.xlu1 %v5016_v30, %s4823_s27  ;;  %v520_v31 = vpop.xlane.xlu0 %519 }
 0x47d   :  { %v524_v39 = vsub.f32 %v506_v13, %v520_v31  ;;  %4689 = vpow2.f32 %v529_v38 }
 0x47f   :  { %v554_v32 = vpop.permute.xlu1 %553  ;;  %v531_v41 = vmul.f32 1.442695, %v524_v39 }
 0x480   :  { %879 = vrot.lane.b32.xlu1 %v5010_v26, %s4822_s26  ;;  %4243 = vmatpush3.msra.mxu0 %v554_v32  ;;  %v5022_v33 = vpop.permute.xlu0 %882 }
 0x481   :  { %964 = vrot.lane.b32.xlu0 %v5022_v33, %s4823_s27  ;;  %4252 = vmatprep.subr.mxu0 %v4818_v40  ;;  %4691 = vpow2.f32 %v531_v41 }
 0x482   :  { %v4688_v42 = vpop.eup %4687 }
 0x483   :  { %v536_v44 = vsel %vm206_vm2, %v4688_v42, 0.0  ;;  %v706_v49 = vpop.permute.xlu1 %705 }
 0x484   :  { %v630_v34 = vpop.permute.xlu0 %629 }
 0x485   :  { %4248 = vmatpush3.msra.mxu1 %v630_v34 }
 0x486   :  { %4257 = vmatprep.subr.mxu1 %v4818_v40 }
 0x487   :  { %v4690_v45 = vpop.eup %4689  ;;  %v782_v50 = vpop.permute.xlu1 %781 }
 0x488   :  { %v539_v46 = vsel %vm206_vm2, %v4690_v45, 0.0 }
 0x48b   :  { %v4692_v47 = vpop.eup %4691  ;;  %v889_v51 = vpop.permute.xlu1 %888 }
 0x48c   :  { %v542_v48 = vsel %vm206_vm2, %v4692_v47, 0.0 }
 0x4a0   :  { %537 = vadd.xlane.f32.xlu0 %v536_v44 }
 0x4a4   :  { %540 = vadd.xlane.f32.xlu0 %v539_v46 }
 0x4a8   :  { %543 = vadd.xlane.f32.xlu0 %v542_v48 }
 0x4bc   :  { %v535_v52 = vpop.xlane.xlu1 %534 }
 0x4bd   :  { %4693 = vrcp.f32 %v535_v52 }
 0x4be   :  { %1040 = vrot.lane.b32.xlu0 %v5014_v28, %s4823_s27 }
 0x4c0   :  { %v876_v2 = vpop.permute.xlu1 %875 }
 0x4c2   :  { %877 = vrot.lane.b32.xlu0 %v5010_v26, %s4820_s24 }
 0x4c7   :  { %v4694_v53 = vpop.eup %4693 }
 0x4c8   :  { %v549_v54 = vmul.f32 %v4694_v53, %v4686_v24 }
 0x4ca   :  { %4245 = vmatmul.mubr.msk.f32.vlgmr.msra.gmra.mrb[2].mxu0 %vm206_vm2, %v549_v54 }
 0x4cb   :  { %4253 = vmatpush3.msra.mxu0 %v706_v49  ;;  %4254 = vmatprep.mubr.msk.f32.mxu0 %vm4819_vm1, %v4818_v40 }
 0x4cc   :  { %4262 = vmatprep.subr.mxu0 %v4818_v40 }
 0x4ee   :  { %v1117_v7 = vpop.permute.xlu1 %1116 }
 0x4f2   :  { %v880_v9 = vpop.permute.xlu1 %879 }
 0x4f3   :  { %v965_v55 = vpop.permute.xlu0 %964 }
 0x52d   :  { %v538_v56 = vpop.xlane.xlu0 %537 }
 0x52e   :  { %4695 = vrcp.f32 %v538_v56 }
 0x531   :  { %v541_v57 = vpop.xlane.xlu0 %540 }
 0x532   :  { %4697 = vrcp.f32 %v541_v57 }
 0x535   :  { %v544_v58 = vpop.xlane.xlu0 %543 }
 0x536   :  { %4699 = vrcp.f32 %v544_v58 }
 0x538   :  { %v4696_v60 = vpop.eup %4695 }
 0x539   :  { %v550_v62 = vmul.f32 %v4696_v60, %v4688_v42  ;;  %v1041_v5 = vpop.permute.xlu0 %1040 }
 0x53b   :  { %4250 = vmatmul.mubr.msk.f32.vlgmr.msra.gmra.mrb[8].mxu1 %vm206_vm2, %v550_v62 }
 0x53c   :  { %v4698_v63 = vpop.eup %4697  ;;  %4258 = vmatpush3.msra.mxu1 %v782_v50  ;;  %4259 = vmatprep.mubr.msk.f32.mxu1 %vm4819_vm1, %v4818_v40 }
 0x53d   :  { %v551_v0 = vmul.f32 %v4698_v63, %v4690_v45  ;;  %4267 = vmatprep.subr.mxu1 %v4818_v40  ;;  %v878_v8 = vpop.permute.xlu0 %877 }
 0x53f   :  { %4255 = vmatmul.mubr.msk.f32.vlgmr.msra.gmra.mrb[4].mxu0 %vm206_vm2, %v551_v0 }
 0x540   :  { %v4700_v1 = vpop.eup %4699  ;;  %4263 = vmatpush3.xpose.msk.msra.mxu0 %vm206_vm2, %v889_v51  ;;  %4264 = vmatprep.mubr.msk.f32.mxu0 %vm4819_vm1, %v4818_v40 }
 0x541   :  { %v552_v6 = vmul.f32 %v4700_v1, %v4692_v47  ;;  %4272 = vmatprep.subr.mxu0 %v4818_v40  ;;  %v4666_v1 = vpack.i.bf16 %v4918_v22, %v4909_v19 }
 0x543   :  { %4260 = vmatmul.mubr.msk.f32.vlgmr.msra.gmra.mrb[10].mxu1 %vm206_vm2, %v552_v6  ;;  %4265 = vmatmul.mubr.msk.f32.vlgmr.msra.gmra.mrb[6].mxu0 %vm206_vm2, %v5010_v26 }
 0x544   :  { %4268 = vmatpush3.xpose.msk.msra.mxu1 %vm206_vm2, %v965_v55  ;;  %4273 = vmatpush3.xpose.msk.msra.mxu0 %vm206_vm2, %v1041_v5 }
 0x545   :  { %4269 = vmatprep.mubr.msk.f32.mxu1 %vm4819_vm1, %v4818_v40  ;;  %4274 = vmatprep.mubr.msk.f32.mxu0 %vm4819_vm1, %v4818_v40 }
 0x546   :  { %4277 = vmatprep.subr.mxu1 %v4818_v40  ;;  %4282 = vmatprep.subr.mxu0 %v4818_v40 }
 0x547   :  { %4270 = vmatmul.mubr.msk.f32.vlgmr.msra.gmra.mrb[12].mxu1 %vm206_vm2, %v876_v2  ;;  %4275 = vmatmul.mubr.msk.f32.vlgmr.msra.gmra.mrb[8].mxu0 %vm206_vm2, %v878_v8 }
 0x548   :  { %4278 = vmatpush3.xpose.msk.msra.mxu1 %vm206_vm2, %v1117_v7  ;;  %4279 = vmatprep.mubr.msk.f32.mxu1 %vm4819_vm1, %v4818_v40 }
 0x549   :  { %4287 = vmatprep.subr.mxu1 %v4818_v40  ;;  %4284 = vmatprep.mubr.msk.f32.mxu0 %vm4819_vm1, %v4818_v40 }
 0x54b   :  { %4280 = vmatmul.mubr.msk.f32.vlgmr.msra.gmra.mrb[14].mxu1 %vm206_vm2, %v880_v9 }
 0x54c   :  { %4289 = vmatprep.mubr.msk.f32.mxu1 %vm4819_vm1, %v4818_v40 }
 0x59d   :  { %v5070_v10 = vpop.f32.mrb[2].mxu0 }
 0x59e   :  { %v4246_v11 = vpop.f32.mrb[3].mxu0 }
 0x60e   :  { %v5072_v12 = vpop.f32.mrb[8].mxu1 }
 0x60f   :  { %v4251_v13 = vpop.f32.mrb[9].mxu1 }
 0x612   :  { %v5074_v14 = vpop.f32.mrb[4].mxu0 }
 0x613   :  { %v4256_v15 = vpop.f32.mrb[5].mxu0 }
 0x616   :  { %v5076_v16 = vpop.f32.mrb[10].mxu1  ;;  %v960_v21 = vpop.f32.mrb[6].mxu0 }
 0x617   :  { %v961_v23 = vadd.f32 %v960_v21, %v4984_v61  ;;  %v4261_v24 = vpop.f32.mrb[11].mxu1  ;;  %v4266_v25 = vpop.f32.mrb[7].mxu0 }
 0x619   :  { %v1192_v26 = vsel %vm206_vm2, %v961_v23, -inf }
 0x61a   :  { %1193 = vmax.xlane.f32.xlu0 %v1192_v26  ;;  %v1036_v27 = vpop.f32.mrb[12].mxu1  ;;  %v1112_v29 = vpop.f32.mrb[8].mxu0 }
 0x61b   :  { %v1037_v31 = vadd.f32 %v1036_v27, %v4984_v61  ;;  %v1113_v32 = vadd.f32 %v1112_v29, %v4984_v61  ;;  %v4271_v34 = vpop.f32.mrb[13].mxu1  ;;  %v4276_v35 = vpop.f32.mrb[9].mxu0 }
 0x61d   :  { %v1198_v36 = vsel %vm206_vm2, %v1113_v32, -inf  ;;  %v1195_v37 = vsel %vm206_vm2, %v1037_v31, -inf }
 0x61e   :  { %1199 = vmax.xlane.f32.xlu0 %v1198_v36  ;;  %1196 = vmax.xlane.f32.xlu1 %v1195_v37  ;;  %v1188_v38 = vpop.f32.mrb[14].mxu1 }
 0x61f   :  { %v1189_v39 = vadd.f32 %v1188_v38, %v4984_v61  ;;  %v4281_v41 = vpop.f32.mrb[15].mxu1 }
 0x621   :  { %v1201_v42 = vsel %vm206_vm2, %v1189_v39, -inf }
 0x622   :  { %1202 = vmax.xlane.f32.xlu0 %v1201_v42 }
 0x62f   :  { %1312 = vrot.lane.b32.xlu1 %v5022_v33, %s4825_s28 }
 0x633   :  { %1388 = vrot.lane.b32.xlu1 %v5014_v28, %s4825_s28 }
 0x6a7   :  { %v1194_v44 = vpop.xlane.xlu0 %1193 }
 0x6a8   :  { %v1204_v45 = vsub.f32 %v961_v23, %v1194_v44 }
 0x6aa   :  { %v1208_v46 = vmul.f32 1.442695, %v1204_v45 }
 0x6ab   :  { %v1200_v47 = vpop.xlane.xlu0 %1199  ;;  %v1197_v48 = vpop.xlane.xlu1 %1196 }
 0x6ac   :  { %4701 = vpow2.f32 %v1208_v46  ;;  %v1206_v49 = vsub.f32 %v1113_v32, %v1200_v47  ;;  %v1205_v50 = vsub.f32 %v1037_v31, %v1197_v48 }
 0x6ae   :  { %v1212_v51 = vmul.f32 1.442695, %v1206_v49  ;;  %v1210_v52 = vmul.f32 1.442695, %v1205_v50  ;;  %v3987_v50 = vld [vmem:[%s5587_s2 + $0x2] ss:$0 sm:$0xff] }
 0x6af   :  { %v1313_v53 = vpop.permute.xlu1 %1312  ;;  %v1203_v54 = vpop.xlane.xlu0 %1202 }
 0x6b0   :  { %4703 = vpow2.f32 %v1212_v51  ;;  %v1207_v55 = vsub.f32 %v1189_v39, %v1203_v54  ;;  %4288 = vmatpush3.msra.mxu1 %v1313_v53 }
 0x6b1   :  { %4705 = vpow2.f32 %v1210_v52  ;;  %4297 = vmatprep.subr.mxu1 %v4818_v40 }
 0x6b2   :  { %v1214_v33 = vmul.f32 1.442695, %v1207_v55 }
 0x6b3   :  { %v1389_v22 = vpop.permute.xlu1 %1388 }
 0x6b4   :  { %4707 = vpow2.f32 %v1214_v33 }
 0x6b6   :  { %v4702_v28 = vpop.eup %4701 }
 0x6b7   :  { %v1216_v56 = vsel %vm206_vm2, %v4702_v28, 0.0 }
 0x6b8   :  { %1217 = vadd.xlane.f32.xlu0 %v1216_v56 }
 0x6ba   :  { %v4704_v57 = vpop.eup %4703 }
 0x6bb   :  { %v4706_v58 = vpop.eup %4705  ;;  %v1222_v60 = vsel %vm206_vm2, %v4704_v57, 0.0 }
 0x6bc   :  { %v1219_v62 = vsel %vm206_vm2, %v4706_v58, 0.0  ;;  %1223 = vadd.xlane.f32.xlu0 %v1222_v60 }
 0x6bd   :  { %1220 = vadd.xlane.f32.xlu1 %v1219_v62 }
 0x6be   :  { %v4708_v63 = vpop.eup %4707 }
 0x6bf   :  { %v1225_v0 = vsel %vm206_vm2, %v4708_v63, 0.0 }
 0x6c1   :  { %1226 = vadd.xlane.f32.xlu1 %v1225_v0 }
 0x6d2   :  { %1464 = vrot.lane.b32.xlu1 %v5016_v30, %s4825_s28  ;;  %1236 = vrot.lane.b32.xlu0 %v4935_v43, %s4825_s28 }
 0x6d6   :  { %4667 = vrot.lane.b32.xlu1 %v4666_v1, %s4826_s29  ;;  %4662 = vrot.lane.b32.xlu0 %v4661_v20, %s4826_s29 }
 0x6da   :  { %862 = vrot.lane.b32.xlu1 %v5074_v14, %s4827_s30  ;;  %858 = vrot.lane.b32.xlu0 %v5072_v12, %s4828_s8 }
 0x6de   :  { %866 = vrot.lane.b32.xlu1 %v5076_v16, %s4829_s9 }
 0x745   :  { %v1218_v19 = vpop.xlane.xlu0 %1217 }
 0x746   :  { %4709 = vrcp.f32 %v1218_v19 }
 0x749   :  { %v1224_v43 = vpop.xlane.xlu0 %1223 }
 0x74a   :  { %v1221_v30 = vpop.xlane.xlu1 %1220  ;;  %4711 = vrcp.f32 %v1224_v43  ;;  %v1699_v43 = vld [vmem:[%s5589_s4 + $0x8] sm:$0xff] }
 0x74b   :  { %4713 = vrcp.f32 %v1221_v30 }
 0x74d   :  { %v1237_v17 = vpop.permute.xlu0 %1236 }
 0x74e   :  { %v1227_v18 = vpop.xlane.xlu1 %1226  ;;  %4283 = vmatpush3.msra.mxu0 %v1237_v17  ;;  %v1700_v17 = vld [vmem:[%s5589_s4 + $0x10] sm:$0xff] }
 0x74f   :  { %4715 = vrcp.f32 %v1227_v18  ;;  %4292 = vmatprep.subr.mxu0 %v4818_v40  ;;  %v1701_v18 = vld [vmem:[%s5589_s4 + $0x18] sm:$0xff] }
 0x750   :  { %v4710_v20 = vpop.eup %4709 }
 0x751   :  { %v1232_v2 = vmul.f32 %v4710_v20, %v4702_v28  ;;  %v4663_v5 = vpop.permute.xlu0 %4662  ;;  %v4545_v20 = vpack.c.bf16 %v1701_v18, %v1700_v17  ;;  %v3995_v18 = vld [vmem:[%s5587_s2 + $0x5] ss:$0 sm:$0xff] }
 0x752   :  { %v1465_v6 = vpop.permute.xlu1 %1464  ;;  %v4665_v7 = vunpack.i.h.bf16 %v4663_v5  ;;  %v4664_v8 = vunpack.i.l.bf16 %v4663_v5 }
 0x753   :  { %4285 = vmatmul.mubr.msk.f32.vlgmr.msra.gmra.mrb[10].mxu0 %vm206_vm2, %v1232_v2 }
 0x754   :  { %v4712_v9 = vpop.eup %4711  ;;  %v4533_v11 = vpack.c.bf16 %v4665_v7, %v4664_v8  ;;  %4293 = vmatpush3.msra.mxu0 %v1389_v22  ;;  %4294 = vmatprep.mubr.msk.f32.mxu0 %vm4819_vm1, %v4818_v40  ;;  %v1698_v22 = vld [vmem:[%s5589_s4] sm:$0xff] }
 0x755   :  { %v4714_v12 = vpop.eup %4713  ;;  %v1234_v13 = vmul.f32 %v4712_v9, %v4704_v57  ;;  %v859_v26 = vpop.permute.xlu0 %858  ;;  %v4541_v30 = vpack.c.bf16 %v1699_v43, %v1698_v22 }
 0x756   :  { %v1233_v14 = vmul.f32 %v4714_v12, %v4706_v58  ;;  %v4668_v15 = vpop.permute.xlu1 %4667  ;;  %4534 = vmatprep.subr.bf16.mxu0 %v4533_v11  ;;  %v869_v29 = vsel %vm206_vm2, %v5070_v10, %v859_v26  ;;  %v3988_v12 = vld [vmem:[%s5587_s2 + $0x3] ss:$0 sm:$0xff] }
 0x757   :  { %v4670_v16 = vunpack.i.h.bf16 %v4668_v15  ;;  %v4669_v21 = vunpack.i.l.bf16 %v4668_v15  ;;  %4295 = vmatmul.mubr.msk.f32.vlgmr.msra.gmra.mrb[12].mxu0 %vm206_vm2, %v1234_v13  ;;  %v1803_v26 = vld [vmem:[%s5590_s5] sm:$0xff] }
 0x758   :  { %4290 = vmatmul.mubr.msk.f32.vlgmr.msra.gmra.mrb[16].mxu1 %vm206_vm2, %v1233_v14  ;;  %4536 = vmatpush3.bf16.msra.mxu0 %v4533_v11  ;;  %v3989_v14 = vld [vmem:[%s5587_s2 + $0x4] ss:$0 sm:$0xff] }
 0x759   :  { %v4716_v23 = vpop.eup %4715  ;;  %v4537_v24 = vpack.c.bf16 %v4670_v16, %v4669_v21  ;;  %4298 = vmatpush3.msra.mxu1 %v1465_v6  ;;  %4299 = vmatprep.mubr.msk.f32.mxu1 %vm4819_vm1, %v4818_v40 }
 0x75a   :  { %v1235_v25 = vmul.f32 %v4716_v23, %v4708_v63  ;;  %v863_v27 = vpop.permute.xlu1 %862  ;;  %4542 = vmatprep.subr.bf16.mxu1 %v4541_v30 }
 0x75b   :  { %4538 = vmatprep.subr.bf16.mxu0 %v4537_v24  ;;  %v871_v31 = vsel %vm870_vm4, %v869_v29, %v863_v27  ;;  %v1804_v27 = vld [vmem:[%s5590_s5 + $0x8] sm:$0xff] }
 0x75c   :  { %4300 = vmatmul.mubr.msk.f32.vlgmr.msra.gmra.mrb[18].mxu1 %vm206_vm2, %v1235_v25  ;;  %4540 = vmatpush3.bf16.msra.mxu0 %v4537_v24  ;;  %v4549_v29 = vpack.c.bf16 %v1804_v27, %v1803_v26  ;;  %v5249_v26 = vld [vmem:[%s5588_s3 + $0x28] sm:$0xff] }
 0x75d   :  { %4544 = vmatpush3.bf16.msra.mxu1 %v4541_v30 }
 0x75e   :  { %v867_v32 = vpop.permute.xlu1 %866  ;;  %4546 = vmatprep.subr.bf16.mxu1 %v4545_v20  ;;  %4550 = vmatprep.subr.bf16.mxu0 %v4549_v29 }
 0x75f   :  { %v873_v34 = vsel %vm872_vm5, %v871_v31, %v867_v32  ;;  %v1805_v31 = vld [vmem:[%s5590_s5 + $0x10] sm:$0xff]  ;;  %v1806_v32 = vld [vmem:[%s5590_s5 + $0x18] sm:$0xff] }
 0x760   :  { %4310 = vmatprep.mubr.msk.f32.mxu0 %vm63_vm0, %v873_v34  ;;  %v4553_v34 = vpack.c.bf16 %v1806_v32, %v1805_v31  ;;  %v5258_v31 = vld [vmem:[%s5588_s3 + $0x30] sm:$0xff]  ;;  %v5263_v32 = vld [vmem:[%s5588_s3 + $0x38] sm:$0xff] }
 0x761   :  { %4548 = vmatpush3.bf16.msra.mxu1 %v4545_v20 }
 0x826   :  { %v1308_v35 = vpop.f32.mrb[10].mxu0 }
 0x827   :  { %v4286_v36 = vpop.f32.mrb[11].mxu0 }
 0x828   :  { %v1808_v36 = vld [vmem:[%s5590_s5 + $0x28] sm:$0xff] }
 0x82a   :  { %v1460_v37 = vpop.f32.mrb[12].mxu0 }
 0x82b   :  { %v1384_v38 = vpop.f32.mrb[16].mxu1  ;;  %v4296_v39 = vpop.f32.mrb[13].mxu0 }
 0x82c   :  { %1541 = vrot.lane.b32.xlu0 %v1384_v38, %s4828_s8  ;;  %v4291_v41 = vpop.f32.mrb[17].mxu1  ;;  %v1809_v38 = vld [vmem:[%s5590_s5 + $0x30] sm:$0xff]  ;;  %v1810_v39 = vld [vmem:[%s5590_s5 + $0x38] sm:$0xff] }
 0x82d   :  { %v4561_v41 = vpack.c.bf16 %v1810_v39, %v1809_v38 }
 0x82f   :  { %v1536_v42 = vpop.f32.mrb[18].mxu1 }
 0x830   :  { %1545 = vrot.lane.b32.xlu0 %v1460_v37, %s4827_s30  ;;  %1549 = vrot.lane.b32.xlu1 %v1536_v42, %s4829_s9  ;;  %v4301_v10 = vpop.f32.mrb[19].mxu1  ;;  %v1811_v42 = vld [vmem:[%s5590_s5 + $0x40] sm:$0xff] }
 0x831   :  { %v1812_v10 = vld [vmem:[%s5590_s5 + $0x48] sm:$0xff] }
 0x89e   :  { %v1542_v44 = vpop.permute.xlu0 %1541 }
 0x89f   :  { %v1552_v45 = vsel %vm206_vm2, %v1308_v35, %v1542_v44  ;;  %v1807_v35 = vld [vmem:[%s5590_s5 + $0x20] sm:$0xff]  ;;  %v4565_v44 = vpack.c.bf16 %v1812_v10, %v1811_v42 }
 0x8a0   :  { %v4557_v37 = vpack.c.bf16 %v1808_v36, %v1807_v35  ;;  %v4585_v35 = vpack.c.bf16 %v5263_v32, %v5258_v31 }
 0x8a2   :  { %v1546_v46 = vpop.permute.xlu0 %1545  ;;  %v1550_v47 = vpop.permute.xlu1 %1549 }
 0x8a3   :  { %v1553_v48 = vsel %vm870_vm4, %v1552_v45, %v1546_v46  ;;  %v1813_v45 = vld [vmem:[%s5590_s5 + $0x50] sm:$0xff]  ;;  %v1814_v46 = vld [vmem:[%s5590_s5 + $0x58] sm:$0xff] }
 0x8a4   :  { %v1554_v49 = vsel %vm872_vm5, %v1553_v48, %v1550_v47  ;;  %v4569_v47 = vpack.c.bf16 %v1814_v46, %v1813_v45  ;;  %v1815_v48 = vld [vmem:[%s5590_s5 + $0x60] sm:$0xff] }
 0x8a5   :  { %4311 = vmatmul.mubr.msk.f32.vlgmr.msra.gmra.mrb[14].mxu0 %vm63_vm0, %v1554_v49  ;;  %v1816_v49 = vld [vmem:[%s5590_s5 + $0x68] sm:$0xff] }
 0x8a6   :  { %4552 = vmatpush3.bf16.msra.mxu0 %v4549_v29 }
 0x8a7   :  { %4554 = vmatprep.subr.bf16.mxu0 %v4553_v34 }
 0x8aa   :  { %4556 = vmatpush3.bf16.msra.mxu0 %v4553_v34  ;;  %v4676_v34 = vpack.i.bf16 %v5263_v32, %v5258_v31 }
 0x8ab   :  { %4558 = vmatprep.subr.bf16.mxu0 %v4557_v37 }
 0x8ae   :  { %4560 = vmatpush3.bf16.msra.mxu0 %v4557_v37 }
 0x8af   :  { %4562 = vmatprep.subr.bf16.mxu0 %v4561_v41 }
 0x8b2   :  { %4564 = vmatpush3.bf16.msra.mxu0 %v4561_v41 }
 0x8b3   :  { %4566 = vmatprep.subr.bf16.mxu0 %v4565_v44 }
 0x8b6   :  { %4568 = vmatpush3.bf16.msra.mxu0 %v4565_v44  ;;  %v4000_v44 = vld [vmem:[%s5587_s2 + $0x8] ss:$0 sm:$0xff] }
 0x8b7   :  { %4570 = vmatprep.subr.bf16.mxu0 %v4569_v47 }
 0x8ba   :  { %4572 = vmatpush3.bf16.msra.mxu0 %v4569_v47 }
 0x978   :  { %v4312_v51 = vpop.f32.mrb[14].mxu0 }
 0x979   :  { %v1653_v52 = vadd.f32 %v4312_v51, %v4886_v4  ;;  %v1643_v53 = vpop.f32.mrb[15].mxu0  ;;  %v1817_v51 = vld [vmem:[%s5590_s5 + $0x70] sm:$0xff] }
 0x97a   :  { %v1652_v54 = vadd.f32 %v1643_v53, %v4884_v3 }
 0x97b   :  { %v5138_v55 = vadd.f32 %v3987_v50, %v1653_v52  ;;  %v1818_v52 = vld [vmem:[%s5590_s5 + $0x78] sm:$0xff] }
 0x97c   :  { %v5140_v33 = vadd.f32 %v3987_v50, %v1652_v54  ;;  %v4573_v50 = vpack.c.bf16 %v1816_v49, %v1815_v48  ;;  %v4577_v53 = vpack.c.bf16 %v1818_v52, %v1817_v51  ;;  %v3990_v54 = vld [vmem:[%s5587_s2 + $0x7] ss:$0 sm:$0xff]  ;;  %v4001_v48 = vld [vmem:[%s5587_s2 + $0x9] ss:$0 sm:$0xff] }
 0x97d   :  { %v1663_v28 = vsel %vm63_vm0, %v5138_v55, 0.0 }
 0x97e   :  { %1664 = vadd.xlane.f32.xlu1 %v1663_v28  ;;  %v1660_v56 = vsel %vm63_vm0, %v5140_v33, 0.0  ;;  %4574 = vmatprep.subr.bf16.mxu0 %v4573_v50 }
 0x97f   :  { %1661 = vadd.xlane.f32.xlu0 %v1660_v56  ;;  %4576 = vmatpush3.bf16.msra.mxu0 %v4573_v50 }
 0x980   :  { %4578 = vmatprep.subr.bf16.mxu0 %v4577_v53 }
 0x983   :  { %4580 = vmatpush3.bf16.msra.mxu0 %v4577_v53  ;;  %v4002_v53 = vld [vmem:[%s5587_s2 + $0xe] ss:$0 sm:$0xff] }
 0x984   :  { %4400 = vmatprep.subr.mxu0 %v4818_v40 }
 0xa0b   :  { %v1665_v57 = vpop.xlane.xlu1 %1664 }
 0xa0c   :  { %v1667_v58 = vmul.f32 0.03125, %v1665_v57  ;;  %v1662_v60 = vpop.xlane.xlu0 %1661 }
 0xa0d   :  { %v1666_v62 = vmul.f32 0.03125, %v1662_v60 }
 0xa0e   :  { %v1669_v4 = vsub.f32 %v5138_v55, %v1667_v58 }
 0xa0f   :  { %v1668_v3 = vsub.f32 %v5140_v33, %v1666_v62 }
 0xa10   :  { %v1671_v1 = vmul.f32 %v1669_v4, %v1669_v4 }
 0xa11   :  { %v1670_v63 = vmul.f32 %v1668_v3, %v1668_v3 }
 0xa12   :  { %v1675_v19 = vsel %vm63_vm0, %v1671_v1, 0.0 }
 0xa13   :  { %v1672_v0 = vsel %vm63_vm0, %v1670_v63, 0.0 }
 0xa14   :  { %1673 = vadd.xlane.f32.xlu0 %v1672_v0 }
 0xa18   :  { %1676 = vadd.xlane.f32.xlu0 %v1675_v19 }
 0xaa1   :  { %v1674_v2 = vpop.xlane.xlu0 %1673 }
 0xaa2   :  { %v1678_v5 = vmul.f32 0.03125, %v1674_v2 }
 0xaa4   :  { %v1680_v6 = vadd.f32 1e-05, %v1678_v5 }
 0xaa5   :  { %v1677_v7 = vpop.xlane.xlu0 %1676 }
 0xaa6   :  { %4717 = vrsqrt.f32 %v1680_v6  ;;  %v1679_v8 = vmul.f32 0.03125, %v1677_v7 }
 0xaa8   :  { %v1681_v9 = vadd.f32 1e-05, %v1679_v8 }
 0xaaa   :  { %4719 = vrsqrt.f32 %v1681_v9 }
 0xab0   :  { %v4718_v11 = vpop.eup %4717 }
 0xab1   :  { %v1684_v13 = vmul.f32 %v4718_v11, %v1668_v3 }
 0xab3   :  { %v1690_v15 = vmul.f32 %v3988_v12, %v1684_v13 }
 0xab4   :  { %v4720_v16 = vpop.eup %4719 }
 0xab5   :  { %v1685_v21 = vmul.f32 %v4720_v16, %v1669_v4  ;;  %v1696_v23 = vadd.f32 %v3989_v14, %v1690_v15 }
 0xab7   :  { %v1691_v24 = vmul.f32 %v3988_v12, %v1685_v21  ;;  %4321 = vmatprep.mubr.msk.f32.mxu1 %vm63_vm0, %v1696_v23 }
 0xab9   :  { %v1697_v25 = vadd.f32 %v3989_v14, %v1691_v24 }
 0xabb   :  { %4322 = vmatmul.mubr.msk.f32.vlgmr.msra.gmra.mrb[20].mxu1 %vm63_vm0, %v1697_v25  ;;  %v5244_v25 = vld [vmem:[%s5588_s3 + $0x20] sm:$0xff]  ;;  %s3751_s3 = sld [smem:[#allocation2]] }
 0xabc   :  { %v4581_v27 = vpack.c.bf16 %v5249_v26, %v5244_v25  ;;  %v4671_v29 = vpack.i.bf16 %v5249_v26, %v5244_v25 }
 0xabe   :  { %4582 = vmatprep.subr.bf16.mxu1 %v4581_v27 }
 0xabf   :  { %4584 = vmatpush3.bf16.msra.mxu1 %v4581_v27 }
 0xac0   :  { %4586 = vmatprep.subr.bf16.mxu1 %v4585_v35 }
 0xac3   :  { %4588 = vmatpush3.bf16.msra.mxu1 %v4585_v35 }
 0xac4   :  { %4370 = vmatprep.subr.mxu1 %v4818_v40 }
 0xb8e   :  { %v4323_v28 = vpop.f32.mrb[20].mxu1 }
 0xb8f   :  { %v1784_v56 = vadd.f32 %v4323_v28, %v3990_v54  ;;  %v1778_v57 = vpop.f32.mrb[21].mxu1 }
 0xb90   :  { %v1779_v58 = vadd.f32 %v3990_v54, %v1778_v57 }
 0xb91   :  { %v3994_v60 = vmul.f32 -1.702, %v1784_v56 }
 0xb92   :  { %v3993_v62 = vmul.f32 -1.702, %v1779_v58 }
 0xb93   :  { %v1793_v4 = vmul.f32 1.442695, %v3994_v60 }
 0xb94   :  { %v1791_v3 = vmul.f32 1.442695, %v3993_v62 }
 0xb95   :  { %4721 = vpow2.f32 %v1793_v4 }
 0xb96   :  { %4723 = vpow2.f32 %v1791_v3 }
 0xb9f   :  { %v4722_v63 = vpop.eup %4721 }
 0xba0   :  { %v4724_v0 = vpop.eup %4723  ;;  %v1796_v1 = vadd.f32 1.0, %v4722_v63 }
 0xba1   :  { %v1795_v19 = vadd.f32 1.0, %v4724_v0 }
 0xba2   :  { %4725 = vrcp.f32 %v1796_v1 }
 0xba3   :  { %4727 = vrcp.f32 %v1795_v19 }
 0xbac   :  { %v4726_v22 = vpop.eup %4725 }
 0xbad   :  { %v4728_v43 = vpop.eup %4727  ;;  %v1802_v17 = vmul.f32 %v4726_v22, %v1784_v56 }
 0xbae   :  { %v1801_v30 = vmul.f32 %v4728_v43, %v1779_v58 }
 0xbb0   :  { %4356 = vmatprep.mubr.f32.mxu0 %v1801_v30 }
 0xbb1   :  { %4357 = vmatmul.mubr.f32.vlgmr.msra.gmra.mrb[16].mxu0 %v1802_v17 }
 0xbb2   :  { %4402 = vmatprep.mubr.msk.f32.mxu0 %vm4819_vm1, %v4818_v40 }
 0xc84   :  { %v4358_v20 = vpop.f32.mrb[16].mxu0 }
 0xc85   :  { %v1895_v2 = vadd.f32 %v4358_v20, %v5138_v55  ;;  %v1885_v5 = vpop.f32.mrb[17].mxu0 }
 0xc86   :  { %v1894_v6 = vadd.f32 %v1885_v5, %v5140_v33 }
 0xc87   :  { %v5229_v7 = vadd.f32 %v3995_v18, %v1895_v2 }
 0xc88   :  { %v5231_v8 = vadd.f32 %v3995_v18, %v1894_v6 }
 0xc89   :  { %v1918_v9 = vsel %vm63_vm0, %v5229_v7, 0.0 }
 0xc8a   :  { %1919 = vadd.xlane.f32.xlu1 %v1918_v9  ;;  %v1915_v11 = vsel %vm63_vm0, %v5231_v8, 0.0 }
 0xc8b   :  { %1916 = vadd.xlane.f32.xlu0 %v1915_v11 }
 0xd17   :  { %v1920_v12 = vpop.xlane.xlu1 %1919 }
 0xd18   :  { %v1922_v13 = vmul.f32 0.03125, %v1920_v12  ;;  %v1917_v14 = vpop.xlane.xlu0 %1916 }
 0xd19   :  { %v1921_v15 = vmul.f32 0.03125, %v1917_v14 }
 0xd1a   :  { %v1924_v55 = vsub.f32 %v5229_v7, %v1922_v13 }
 0xd1b   :  { %v1923_v33 = vsub.f32 %v5231_v8, %v1921_v15 }
 0xd1c   :  { %v1926_v16 = vmul.f32 %v1924_v55, %v1924_v55 }
 0xd1d   :  { %v1925_v21 = vmul.f32 %v1923_v33, %v1923_v33 }
 0xd1e   :  { %v1930_v23 = vsel %vm63_vm0, %v1926_v16, 0.0 }
 0xd1f   :  { %1931 = vadd.xlane.f32.xlu1 %v1930_v23  ;;  %v1927_v24 = vsel %vm63_vm0, %v1925_v21, 0.0 }
 0xd20   :  { %1928 = vadd.xlane.f32.xlu0 %v1927_v24 }
 0xdac   :  { %v1932_v36 = vpop.xlane.xlu1 %1931 }
 0xdad   :  { %v1934_v37 = vmul.f32 0.03125, %v1932_v36  ;;  %v1929_v38 = vpop.xlane.xlu0 %1928 }
 0xdae   :  { %v1933_v39 = vmul.f32 0.03125, %v1929_v38 }
 0xdaf   :  { %v1936_v41 = vadd.f32 1e-05, %v1934_v37 }
 0xdb0   :  { %v1935_v42 = vadd.f32 1e-05, %v1933_v39 }
 0xdb1   :  { %4729 = vrsqrt.f32 %v1936_v41 }
 0xdb2   :  { %4731 = vrsqrt.f32 %v1935_v42 }
 0xdbb   :  { %v4730_v10 = vpop.eup %4729 }
 0xdbc   :  { %v4732_v45 = vpop.eup %4731  ;;  %v1940_v46 = vmul.f32 %v4730_v10, %v1924_v55 }
 0xdbd   :  { %v1939_v47 = vmul.f32 %v4732_v45, %v1923_v33 }
 0xdbe   :  { %v1946_v49 = vmul.f32 %v4000_v44, %v1940_v46 }
 0xdbf   :  { %v1945_v50 = vmul.f32 %v4000_v44, %v1939_v47 }
 0xdc0   :  { %v1952_v52 = vadd.f32 %v4001_v48, %v1946_v49 }
 0xdc1   :  { %v1951_v51 = vadd.f32 %v4001_v48, %v1945_v50 }
 0xdc3   :  { %4367 = vmatprep.mubr.msk.f32.mxu1 %vm63_vm0, %v1951_v51 }
 0xdc4   :  { %4368 = vmatmul.mubr.msk.f32.vlgmr.msra.gmra.mrb[22].mxu1 %vm63_vm0, %v1952_v52 }
 0xdc5   :  { %4372 = vmatprep.mubr.msk.f32.mxu1 %vm4819_vm1, %v4818_v40 }
 0xe97   :  { %v4369_v54 = vpop.f32.mrb[22].mxu1 }
 0xe98   :  { %v5283_v28 = vadd.f32 %v4369_v54, %v4002_v53  ;;  %v2029_v56 = vpop.f32.mrb[23].mxu1 }
 0xe99   :  { %v2030_v57 = vadd.f32 %v4002_v53, %v2029_v56 }
 0xe9a   :  { %v5337_v36 = vmul.f32 0.35355338, %v5283_v28 }
 0xe9b   :  { %2050 = vrot.lane.b32.xlu1 %v2030_v57, %s4820_s24  ;;  %2048 = vrot.lane.b32.xlu0 %v2030_v57, %s4821_s25  ;;  %v2038_v58 = vmul.f32 0.35355338, %v2030_v57 }
 0xe9f   :  { %2052 = vrot.lane.b32.xlu1 %v2030_v57, %s4822_s26 }
 0xea3   :  { %2054 = vrot.lane.b32.xlu1 %v2030_v57, %s4823_s27 }
 0xea7   :  { %2041 = vrot.lane.b32.xlu1 %v2038_v58, %s4821_s25 }
 0xeab   :  { %2043 = vrot.lane.b32.xlu1 %v2038_v58, %s4820_s24 }
 0xeaf   :  { %2045 = vrot.lane.b32.xlu1 %v2038_v58, %s4822_s26 }
 0xf0d   :  { %v2051_v60 = vpop.permute.xlu1 %2050  ;;  %v2049_v62 = vpop.permute.xlu0 %2048 }
 0xf0e   :  { %2130 = vrot.lane.b32.xlu0 %v2049_v62, %s4823_s27 }
 0xf11   :  { %v2053_v4 = vpop.permute.xlu1 %2052 }
 0xf12   :  { %2206 = vrot.lane.b32.xlu0 %v2051_v60, %s4823_s27 }
 0xf15   :  { %v2055_v3 = vpop.permute.xlu1 %2054 }
 0xf16   :  { %4371 = vmatpush3.xpose.msk.msra.mxu1 %vm206_vm2, %v2055_v3  ;;  %2282 = vrot.lane.b32.xlu0 %v2053_v4, %s4823_s27 }
 0xf17   :  { %4375 = vmatprep.subr.mxu1 %v4818_v40 }
 0xf19   :  { %4373 = vmatmul.mubr.msk.f32.vlgmr.msra.gmra.mrb[24].mxu1 %vm206_vm2, %v2038_v58  ;;  %v2042_v63 = vpop.permute.xlu1 %2041 }
 0xf1a   :  { %4377 = vmatprep.mubr.msk.f32.mxu1 %vm4819_vm1, %v4818_v40 }
 0xf1d   :  { %v2044_v19 = vpop.permute.xlu1 %2043 }
 0xf21   :  { %v2046_v43 = vpop.permute.xlu1 %2045 }
 0xf80   :  { %v2131_v0 = vpop.permute.xlu0 %2130 }
 0xf81   :  { %4376 = vmatpush3.xpose.msk.msra.mxu1 %vm206_vm2, %v2131_v0 }
 0xf82   :  { %4380 = vmatprep.subr.mxu1 %v4818_v40 }
 0xf84   :  { %v2207_v1 = vpop.permute.xlu0 %2206  ;;  %4378 = vmatmul.mubr.msk.f32.vlgmr.msra.gmra.mrb[26].mxu1 %vm206_vm2, %v2042_v63 }
 0xf85   :  { %4381 = vmatpush3.xpose.msk.msra.mxu1 %vm206_vm2, %v2207_v1  ;;  %4382 = vmatprep.mubr.msk.f32.mxu1 %vm4819_vm1, %v4818_v40 }
 0xf86   :  { %4385 = vmatprep.subr.mxu1 %v4818_v40 }
 0xf88   :  { %v2283_v22 = vpop.permute.xlu0 %2282  ;;  %4383 = vmatmul.mubr.msk.f32.vlgmr.msra.gmra.mrb[28].mxu1 %vm206_vm2, %v2044_v19 }
 0xf89   :  { %4386 = vmatpush3.xpose.msk.msra.mxu1 %vm206_vm2, %v2283_v22  ;;  %4387 = vmatprep.mubr.msk.f32.mxu1 %vm4819_vm1, %v4818_v40 }
 0xf8a   :  { %4390 = vmatprep.subr.mxu1 %v4818_v40 }
 0xf8c   :  { %4388 = vmatmul.mubr.msk.f32.vlgmr.msra.gmra.mrb[30].mxu1 %vm206_vm2, %v2046_v43 }
 0xf8d   :  { %4392 = vmatprep.mubr.msk.f32.mxu1 %vm4819_vm1, %v4818_v40 }
 0xfec   :  { %v2126_v30 = vpop.f32.mrb[24].mxu1 }
 0xfed   :  { %v2127_v17 = vadd.f32 %v2126_v30, %v4984_v61  ;;  %v4374_v18 = vpop.f32.mrb[25].mxu1 }
 0xfef   :  { %v2358_v20 = vsel %vm206_vm2, %v2127_v17, -inf }
 0xff0   :  { %2359 = vmax.xlane.f32.xlu0 %v2358_v20 }
0x1057   :  { %v2202_v2 = vpop.f32.mrb[26].mxu1 }
0x1058   :  { %v2203_v5 = vadd.f32 %v2202_v2, %v4984_v61  ;;  %v4379_v6 = vpop.f32.mrb[27].mxu1 }
0x105a   :  { %v2361_v9 = vsel %vm206_vm2, %v2203_v5, -inf }
0x105b   :  { %2362 = vmax.xlane.f32.xlu1 %v2361_v9  ;;  %v2278_v11 = vpop.f32.mrb[28].mxu1 }
0x105c   :  { %v2279_v12 = vadd.f32 %v2278_v11, %v4984_v61  ;;  %v4384_v13 = vpop.f32.mrb[29].mxu1 }
0x105e   :  { %v2364_v14 = vsel %vm206_vm2, %v2279_v12, -inf }
0x105f   :  { %2365 = vmax.xlane.f32.xlu0 %v2364_v14  ;;  %v2354_v15 = vpop.f32.mrb[30].mxu1 }
0x1060   :  { %v2355_v55 = vadd.f32 %v2354_v15, %v4984_v61  ;;  %v4389_v33 = vpop.f32.mrb[31].mxu1 }
0x1062   :  { %v2367_v16 = vsel %vm206_vm2, %v2355_v55, -inf }
0x1063   :  { %2368 = vmax.xlane.f32.xlu0 %v2367_v16 }
0x106c   :  { %2731 = vrot.lane.b32.xlu1 %v5283_v28, %s4820_s24 }
0x1070   :  { %2733 = vrot.lane.b32.xlu1 %v5283_v28, %s4822_s26 }
0x1074   :  { %2402 = vrot.lane.b32.xlu1 %v2030_v57, %s4825_s28 }
0x1078   :  { %2554 = vrot.lane.b32.xlu1 %v2051_v60, %s4825_s28 }
0x1079   :  { %2729 = vrot.lane.b32.xlu0 %v5283_v28, %s4821_s25 }
0x107c   :  { %2630 = vrot.lane.b32.xlu1 %v2053_v4, %s4825_s28 }
0x107d   :  { %2478 = vrot.lane.b32.xlu0 %v2049_v62, %s4825_s28  ;;  %v2360_v21 = vpop.xlane.xlu0 %2359 }
0x107e   :  { %v2370_v23 = vsub.f32 %v2127_v17, %v2360_v21 }
0x1080   :  { %v2374_v24 = vmul.f32 1.442695, %v2370_v23 }
0x1082   :  { %4733 = vpow2.f32 %v2374_v24 }
0x108c   :  { %v4734_v27 = vpop.eup %4733 }
0x108d   :  { %v2382_v35 = vsel %vm206_vm2, %v4734_v27, 0.0 }
0x10a0   :  { %2383 = vadd.xlane.f32.xlu1 %v2382_v35 }
0x10b1   :  { %2735 = vrot.lane.b32.xlu1 %v5283_v28, %s4823_s27 }
0x10b5   :  { %2722 = vrot.lane.b32.xlu1 %v5337_v36, %s4821_s25 }
0x10e8   :  { %v2363_v37 = vpop.xlane.xlu1 %2362 }
0x10e9   :  { %v2371_v46 = vsub.f32 %v2203_v5, %v2363_v37 }
0x10eb   :  { %v2376_v47 = vmul.f32 1.442695, %v2371_v46 }
0x10ec   :  { %v5341_v38 = vpop.permute.xlu1 %2731  ;;  %v2366_v39 = vpop.xlane.xlu0 %2365 }
0x10ed   :  { %v2372_v48 = vsub.f32 %v2279_v12, %v2366_v39  ;;  %4735 = vpow2.f32 %v2376_v47 }
0x10ef   :  { %v2378_v49 = vmul.f32 1.442695, %v2372_v48 }
0x10f0   :  { %v5343_v41 = vpop.permute.xlu1 %2733  ;;  %v2369_v42 = vpop.xlane.xlu0 %2368 }
0x10f1   :  { %2963 = vrot.lane.b32.xlu1 %v5343_v41, %s4823_s27  ;;  %v2373_v50 = vsub.f32 %v2355_v55, %v2369_v42  ;;  %4737 = vpow2.f32 %v2378_v49 }
0x10f3   :  { %v2380_v51 = vmul.f32 1.442695, %v2373_v50 }
0x10f4   :  { %v2403_v10 = vpop.permute.xlu1 %2402  ;;  %v5347_v44 = vpop.permute.xlu0 %2729 }
0x10f5   :  { %2726 = vrot.lane.b32.xlu1 %v5337_v36, %s4822_s26  ;;  %4391 = vmatpush3.msra.mxu1 %v2403_v10  ;;  %4739 = vpow2.f32 %v2380_v51 }
0x10f6   :  { %2811 = vrot.lane.b32.xlu0 %v5347_v44, %s4823_s27  ;;  %4395 = vmatprep.subr.mxu1 %v4818_v40 }
0x10f7   :  { %v4736_v52 = vpop.eup %4735 }
0x10f8   :  { %v2555_v45 = vpop.permute.xlu1 %2554  ;;  %v2385_v53 = vsel %vm206_vm2, %v4736_v52, 0.0  ;;  %v2479_v63 = vpop.permute.xlu0 %2478 }
0x10f9   :  { %4401 = vmatpush3.msra.mxu0 %v2555_v45 }
0x10fa   :  { %4410 = vmatprep.subr.mxu0 %v4818_v40 }
0x10fb   :  { %v4738_v54 = vpop.eup %4737 }
0x10fc   :  { %v2388_v56 = vsel %vm206_vm2, %v4738_v54, 0.0  ;;  %v2631_v60 = vpop.permute.xlu1 %2630 }
0x10ff   :  { %v4740_v57 = vpop.eup %4739 }
0x1100   :  { %v2391_v58 = vsel %vm206_vm2, %v4740_v57, 0.0 }
0x1115   :  { %2386 = vadd.xlane.f32.xlu0 %v2385_v53 }
0x1119   :  { %2389 = vadd.xlane.f32.xlu0 %v2388_v56 }
0x111d   :  { %2392 = vadd.xlane.f32.xlu0 %v2391_v58 }
0x112d   :  { %v2384_v62 = vpop.xlane.xlu1 %2383 }
0x112e   :  { %4741 = vrcp.f32 %v2384_v62 }
0x1131   :  { %v2736_v17 = vpop.permute.xlu1 %2735 }
0x1133   :  { %2887 = vrot.lane.b32.xlu0 %v5341_v38, %s4823_s27 }
0x1135   :  { %v2723_v5 = vpop.permute.xlu1 %2722 }
0x1137   :  { %2724 = vrot.lane.b32.xlu0 %v5337_v36, %s4820_s24 }
0x1138   :  { %v4742_v4 = vpop.eup %4741 }
0x1139   :  { %v2398_v3 = vmul.f32 %v4742_v4, %v4734_v27 }
0x113b   :  { %4393 = vmatmul.mubr.msk.f32.vlgmr.msra.gmra.mrb[32].mxu1 %vm206_vm2, %v2398_v3 }
0x113c   :  { %4396 = vmatpush3.msra.mxu1 %v2479_v63  ;;  %4397 = vmatprep.mubr.msk.f32.mxu1 %vm4819_vm1, %v4818_v40 }
0x113d   :  { %4405 = vmatprep.subr.mxu1 %v4818_v40 }
0x1163   :  { %v2964_v11 = vpop.permute.xlu1 %2963 }
0x1167   :  { %v2727_v13 = vpop.permute.xlu1 %2726 }
0x1168   :  { %v2812_v0 = vpop.permute.xlu0 %2811 }
0x11a2   :  { %v2387_v1 = vpop.xlane.xlu0 %2386 }
0x11a3   :  { %4743 = vrcp.f32 %v2387_v1 }
0x11a6   :  { %v2390_v19 = vpop.xlane.xlu0 %2389 }
0x11a7   :  { %4745 = vrcp.f32 %v2390_v19 }
0x11aa   :  { %v2393_v22 = vpop.xlane.xlu0 %2392 }
0x11ab   :  { %4747 = vrcp.f32 %v2393_v22 }
0x11ad   :  { %v4744_v43 = vpop.eup %4743 }
0x11ae   :  { %v2399_v30 = vmul.f32 %v4744_v43, %v4736_v52  ;;  %v2888_v6 = vpop.permute.xlu0 %2887 }
0x11b0   :  { %4398 = vmatmul.mubr.msk.f32.vlgmr.msra.gmra.mrb[34].mxu1 %vm206_vm2, %v2399_v30 }
0x11b1   :  { %v4746_v18 = vpop.eup %4745  ;;  %4406 = vmatpush3.msra.mxu1 %v2631_v60  ;;  %4407 = vmatprep.mubr.msk.f32.mxu1 %vm4819_vm1, %v4818_v40 }
0x11b2   :  { %v2400_v20 = vmul.f32 %v4746_v18, %v4738_v54  ;;  %4415 = vmatprep.subr.mxu1 %v4818_v40  ;;  %v2725_v12 = vpop.permute.xlu0 %2724 }
0x11b4   :  { %4403 = vmatmul.mubr.msk.f32.vlgmr.msra.gmra.mrb[18].mxu0 %vm206_vm2, %v2400_v20 }
0x11b5   :  { %v4748_v2 = vpop.eup %4747  ;;  %4411 = vmatpush3.xpose.msk.msra.mxu0 %vm206_vm2, %v2736_v17  ;;  %4412 = vmatprep.mubr.msk.f32.mxu0 %vm4819_vm1, %v4818_v40 }
0x11b6   :  { %v2401_v9 = vmul.f32 %v4748_v2, %v4740_v57  ;;  %4420 = vmatprep.subr.mxu0 %v4818_v40 }
0x11b8   :  { %4408 = vmatmul.mubr.msk.f32.vlgmr.msra.gmra.mrb[36].mxu1 %vm206_vm2, %v2401_v9  ;;  %4413 = vmatmul.mubr.msk.f32.vlgmr.msra.gmra.mrb[20].mxu0 %vm206_vm2, %v5337_v36 }
0x11b9   :  { %4416 = vmatpush3.xpose.msk.msra.mxu1 %vm206_vm2, %v2812_v0  ;;  %4421 = vmatpush3.xpose.msk.msra.mxu0 %vm206_vm2, %v2888_v6 }
0x11ba   :  { %4417 = vmatprep.mubr.msk.f32.mxu1 %vm4819_vm1, %v4818_v40  ;;  %4422 = vmatprep.mubr.msk.f32.mxu0 %vm4819_vm1, %v4818_v40 }
0x11bb   :  { %4425 = vmatprep.subr.mxu1 %v4818_v40  ;;  %4430 = vmatprep.subr.mxu0 %v4818_v40 }
0x11bc   :  { %4418 = vmatmul.mubr.msk.f32.vlgmr.msra.gmra.mrb[38].mxu1 %vm206_vm2, %v2723_v5  ;;  %4423 = vmatmul.mubr.msk.f32.vlgmr.msra.gmra.mrb[22].mxu0 %vm206_vm2, %v2725_v12 }
0x11bd   :  { %4426 = vmatpush3.xpose.msk.msra.mxu1 %vm206_vm2, %v2964_v11  ;;  %4427 = vmatprep.mubr.msk.f32.mxu1 %vm4819_vm1, %v4818_v40 }
0x11be   :  { %4435 = vmatprep.subr.mxu1 %v4818_v40  ;;  %4432 = vmatprep.mubr.msk.f32.mxu0 %vm4819_vm1, %v4818_v40 }
0x11c0   :  { %4428 = vmatmul.mubr.msk.f32.vlgmr.msra.gmra.mrb[40].mxu1 %vm206_vm2, %v2727_v13 }
0x11c1   :  { %4437 = vmatprep.mubr.msk.f32.mxu1 %vm4819_vm1, %v4818_v40 }
0x120e   :  { %v5397_v14 = vpop.f32.mrb[32].mxu1 }
0x120f   :  { %v4394_v15 = vpop.f32.mrb[33].mxu1 }
0x1283   :  { %v2550_v55 = vpop.f32.mrb[34].mxu1 }
0x1284   :  { %v4399_v33 = vpop.f32.mrb[35].mxu1 }
0x1287   :  { %v2626_v16 = vpop.f32.mrb[18].mxu0 }
0x1288   :  { %v4404_v21 = vpop.f32.mrb[19].mxu0 }
0x128b   :  { %v2702_v23 = vpop.f32.mrb[36].mxu1  ;;  %v2807_v24 = vpop.f32.mrb[20].mxu0 }
0x128c   :  { %v2808_v27 = vadd.f32 %v2807_v24, %v4984_v61  ;;  %v4409_v35 = vpop.f32.mrb[37].mxu1  ;;  %v4414_v36 = vpop.f32.mrb[21].mxu0 }
0x128e   :  { %v3039_v37 = vsel %vm206_vm2, %v2808_v27, -inf }
0x128f   :  { %3040 = vmax.xlane.f32.xlu0 %v3039_v37  ;;  %v2883_v39 = vpop.f32.mrb[38].mxu1  ;;  %v2959_v42 = vpop.f32.mrb[22].mxu0 }
0x1290   :  { %v2884_v10 = vadd.f32 %v2883_v39, %v4984_v61  ;;  %v2960_v45 = vadd.f32 %v2959_v42, %v4984_v61  ;;  %v4419_v46 = vpop.f32.mrb[39].mxu1  ;;  %v4424_v47 = vpop.f32.mrb[23].mxu0 }
0x1292   :  { %v3045_v48 = vsel %vm206_vm2, %v2960_v45, -inf  ;;  %v3042_v49 = vsel %vm206_vm2, %v2884_v10, -inf }
0x1293   :  { %3046 = vmax.xlane.f32.xlu0 %v3045_v48  ;;  %3043 = vmax.xlane.f32.xlu1 %v3042_v49  ;;  %v3035_v50 = vpop.f32.mrb[40].mxu1 }
0x1294   :  { %v3036_v51 = vadd.f32 %v3035_v50, %v4984_v61  ;;  %v4429_v52 = vpop.f32.mrb[41].mxu1 }
0x1296   :  { %v3048_v53 = vsel %vm206_vm2, %v3036_v51, -inf }
0x1297   :  { %3049 = vmax.xlane.f32.xlu0 %v3048_v53 }
0x131c   :  { %v3041_v54 = vpop.xlane.xlu0 %3040 }
0x131d   :  { %v3051_v56 = vsub.f32 %v2808_v27, %v3041_v54 }
0x131f   :  { %v3055_v57 = vmul.f32 1.442695, %v3051_v56 }
0x1320   :  { %v3047_v58 = vpop.xlane.xlu0 %3046  ;;  %v3044_v60 = vpop.xlane.xlu1 %3043 }
0x1321   :  { %4749 = vpow2.f32 %v3055_v57  ;;  %v3053_v62 = vsub.f32 %v2960_v45, %v3047_v58  ;;  %v3052_v4 = vsub.f32 %v2884_v10, %v3044_v60  ;;  %v4031_v60 = vld [vmem:[%s5587_s2 + $0xa] ss:$0 sm:$0xff] }
0x1323   :  { %v3059_v3 = vmul.f32 1.442695, %v3053_v62  ;;  %v3057_v63 = vmul.f32 1.442695, %v3052_v4 }
0x1324   :  { %v3050_v30 = vpop.xlane.xlu0 %3049 }
0x1325   :  { %4751 = vpow2.f32 %v3059_v3  ;;  %v3054_v17 = vsub.f32 %v3036_v51, %v3050_v30 }
0x1326   :  { %4753 = vpow2.f32 %v3057_v63 }
0x1327   :  { %v3061_v18 = vmul.f32 1.442695, %v3054_v17 }
0x1329   :  { %4755 = vpow2.f32 %v3061_v18 }
0x132b   :  { %v4750_v0 = vpop.eup %4749 }
0x132c   :  { %v3063_v1 = vsel %vm206_vm2, %v4750_v0, 0.0 }
0x132d   :  { %3064 = vadd.xlane.f32.xlu0 %v3063_v1 }
0x132f   :  { %v4752_v61 = vpop.eup %4751 }
0x1330   :  { %v4754_v19 = vpop.eup %4753  ;;  %v3069_v22 = vsel %vm206_vm2, %v4752_v61, 0.0 }
0x1331   :  { %v3066_v43 = vsel %vm206_vm2, %v4754_v19, 0.0  ;;  %3070 = vadd.xlane.f32.xlu0 %v3069_v22 }
0x1332   :  { %3067 = vadd.xlane.f32.xlu1 %v3066_v43 }
0x1333   :  { %v4756_v20 = vpop.eup %4755 }
0x1343   :  { %3159 = vrot.lane.b32.xlu1 %v5347_v44, %s4825_s28  ;;  %v3072_v44 = vsel %vm206_vm2, %v4756_v20, 0.0 }
0x1347   :  { %3235 = vrot.lane.b32.xlu1 %v5341_v38, %s4825_s28  ;;  %3083 = vrot.lane.b32.xlu0 %v5283_v28, %s4825_s28 }
0x134b   :  { %4672 = vrot.lane.b32.xlu0 %v4671_v29, %s4826_s29 }
0x134f   :  { %2707 = vrot.lane.b32.xlu0 %v2550_v55, %s4828_s8 }
0x136b   :  { %3073 = vadd.xlane.f32.xlu1 %v3072_v44 }
0x137c   :  { %3311 = vrot.lane.b32.xlu1 %v5343_v41, %s4825_s28 }
0x1380   :  { %4677 = vrot.lane.b32.xlu1 %v4676_v34, %s4826_s29 }
0x1384   :  { %2711 = vrot.lane.b32.xlu1 %v2626_v16, %s4827_s30 }
0x1388   :  { %2715 = vrot.lane.b32.xlu1 %v2702_v23, %s4829_s9 }
0x13ba   :  { %v3065_v25 = vpop.xlane.xlu0 %3064 }
0x13bb   :  { %4757 = vrcp.f32 %v3065_v25 }
0x13be   :  { %v3071_v26 = vpop.xlane.xlu0 %3070 }
0x13bf   :  { %v3068_v29 = vpop.xlane.xlu1 %3067  ;;  %4759 = vrcp.f32 %v3071_v26  ;;  %v4034_v26 = vld [vmem:[%s5589_s4 + $0x20] sm:$0xff] }
0x13c0   :  { %4761 = vrcp.f32 %v3068_v29  ;;  %v4035_v29 = vld [vmem:[%s5589_s4 + $0x28] sm:$0xff] }
0x13c2   :  { %v3084_v28 = vpop.permute.xlu0 %3083 }
0x13c3   :  { %v3160_v38 = vpop.permute.xlu1 %3159  ;;  %4431 = vmatpush3.msra.mxu0 %v3084_v28  ;;  %v4597_v28 = vpack.c.bf16 %v4035_v29, %v4034_v26 }
0x13c4   :  { %4436 = vmatpush3.msra.mxu1 %v3160_v38  ;;  %4440 = vmatprep.subr.mxu0 %v4818_v40  ;;  %v4036_v38 = vld [vmem:[%s5589_s4 + $0x30] sm:$0xff] }
0x13c5   :  { %v4758_v41 = vpop.eup %4757  ;;  %4445 = vmatprep.subr.mxu1 %v4818_v40 }
0x13c6   :  { %v3079_v31 = vmul.f32 %v4758_v41, %v4750_v0  ;;  %v4673_v32 = vpop.permute.xlu0 %4672  ;;  %v4037_v41 = vld [vmem:[%s5589_s4 + $0x38] sm:$0xff] }
0x13c7   :  { %v3236_v34 = vpop.permute.xlu1 %3235  ;;  %v4675_v2 = vunpack.i.h.bf16 %v4673_v32  ;;  %v4674_v5 = vunpack.i.l.bf16 %v4673_v32 }
0x13c8   :  { %4433 = vmatmul.mubr.msk.f32.vlgmr.msra.gmra.mrb[24].mxu0 %vm206_vm2, %v3079_v31  ;;  %v4601_v31 = vpack.c.bf16 %v4037_v41, %v4036_v38  ;;  %v4830_v38 = vmov 0.0|0.0   ;;  %v3752_v41 = vstv %s3751_s3 }
0x13c9   :  { %v4760_v6 = vpop.eup %4759  ;;  %v4589_v9 = vpack.c.bf16 %v4675_v2, %v4674_v5  ;;  %4441 = vmatpush3.msra.mxu0 %v3236_v34  ;;  %4442 = vmatprep.mubr.msk.f32.mxu0 %vm4819_vm1, %v4818_v40  ;;  %vm3753_vm6 = vcmp.eq.s32.totalorder %v4981_v59, %v3752_v41 }
0x13ca   :  { %v4762_v11 = vpop.eup %4761  ;;  %v3081_v12 = vmul.f32 %v4760_v6, %v4752_v61  ;;  %v2708_v27 = vpop.permute.xlu0 %2707 }
0x13cb   :  { %v3080_v13 = vmul.f32 %v4762_v11, %v4754_v19  ;;  %4590 = vmatprep.subr.bf16.mxu0 %v4589_v9  ;;  %v2718_v37 = vsel %vm206_vm2, %v5397_v14, %v2708_v27  ;;  %v4043_v27 = vld [vmem:[%s5590_s5 + $0x80] sm:$0xff] }
0x13cc   :  { %4443 = vmatmul.mubr.msk.f32.vlgmr.msra.gmra.mrb[26].mxu0 %vm206_vm2, %v3081_v12  ;;  %v4032_v12 = vld [vmem:[%s5587_s2 + $0xb] ss:$0 sm:$0xff] }
0x13cd   :  { %4438 = vmatmul.mubr.msk.f32.vlgmr.msra.gmra.mrb[42].mxu1 %vm206_vm2, %v3080_v13  ;;  %4592 = vmatpush3.bf16.msra.mxu0 %v4589_v9 }
0x13ce   :  { %4447 = vmatprep.mubr.msk.f32.mxu1 %vm4819_vm1, %v4818_v40 }
0x13f8   :  { %v3074_v15 = vpop.xlane.xlu1 %3073 }
0x13f9   :  { %4763 = vrcp.f32 %v3074_v15  ;;  %v4033_v15 = vld [vmem:[%s5587_s2 + $0xc] ss:$0 sm:$0xff] }
0x13fc   :  { %v3312_v55 = vpop.permute.xlu1 %3311 }
0x13fd   :  { %4446 = vmatpush3.msra.mxu1 %v3312_v55 }
0x13fe   :  { %4598 = vmatprep.subr.bf16.mxu1 %v4597_v28 }
0x1400   :  { %v4678_v33 = vpop.permute.xlu1 %4677 }
0x1401   :  { %v4680_v16 = vunpack.i.h.bf16 %v4678_v33  ;;  %v4679_v21 = vunpack.i.l.bf16 %v4678_v33 }
0x1403   :  { %v4764_v23 = vpop.eup %4763  ;;  %v4593_v24 = vpack.c.bf16 %v4680_v16, %v4679_v21 }
0x1404   :  { %v3082_v35 = vmul.f32 %v4764_v23, %v4756_v20  ;;  %v2712_v36 = vpop.permute.xlu1 %2711 }
0x1405   :  { %4594 = vmatprep.subr.bf16.mxu0 %v4593_v24  ;;  %v2719_v39 = vsel %vm870_vm4, %v2718_v37, %v2712_v36  ;;  %v4045_v37 = vld [vmem:[%s5590_s5 + $0x90] sm:$0xff] }
0x1406   :  { %4448 = vmatmul.mubr.msk.f32.vlgmr.msra.gmra.mrb[44].mxu1 %vm206_vm2, %v3082_v35  ;;  %4596 = vmatpush3.bf16.msra.mxu0 %v4593_v24  ;;  %v4044_v35 = vld [vmem:[%s5590_s5 + $0x88] sm:$0xff] }
0x1407   :  { %4600 = vmatpush3.bf16.msra.mxu1 %v4597_v28  ;;  %v4605_v36 = vpack.c.bf16 %v4044_v35, %v4043_v27  ;;  %v3863_v27 = vld [vmem:[%s5591_s6] sm:$0xff]  ;;  %v3864_v35 = vld [vmem:[%s5591_s6 + $0x8] sm:$0xff] }
0x1408   :  { %v2716_v42 = vpop.permute.xlu1 %2715  ;;  %4602 = vmatprep.subr.bf16.mxu1 %v4601_v31 }
0x1409   :  { %v2720_v10 = vsel %vm872_vm5, %v2719_v39, %v2716_v42  ;;  %4606 = vmatprep.subr.bf16.mxu0 %v4605_v36  ;;  %v4046_v39 = vld [vmem:[%s5590_s5 + $0x98] sm:$0xff] }
0x140a   :  { %4458 = vmatprep.mubr.msk.f32.mxu0 %vm63_vm0, %v2720_v10  ;;  %v4609_v42 = vpack.c.bf16 %v4046_v39, %v4045_v37  ;;  %v4047_v10 = vld [vmem:[%s5590_s5 + $0xa0] sm:$0xff]  ;;  %v3866_v37 = vld [vmem:[%s5591_s6 + $0x18] sm:$0xff] }
0x140b   :  { %4604 = vmatpush3.bf16.msra.mxu1 %v4601_v31 }
0x140c   :  { %4637 = vmatprep.subr.bf16.mxu1 %v4830_v38 }
0x149b   :  { %v3155_v45 = vpop.f32.mrb[24].mxu0 }
0x149c   :  { %v4434_v46 = vpop.f32.mrb[25].mxu0 }
0x149f   :  { %v3307_v47 = vpop.f32.mrb[26].mxu0 }
0x14a0   :  { %v3231_v48 = vpop.f32.mrb[42].mxu1  ;;  %v4444_v49 = vpop.f32.mrb[27].mxu0 }
0x14a1   :  { %3388 = vrot.lane.b32.xlu0 %v3231_v48, %s4828_s8  ;;  %v4439_v50 = vpop.f32.mrb[43].mxu1  ;;  %v4050_v48 = vld [vmem:[%s5590_s5 + $0xb8] sm:$0xff] }
0x14a2   :  { %v4051_v50 = vld [vmem:[%s5590_s5 + $0xc0] sm:$0xff] }
0x14a5   :  { %3392 = vrot.lane.b32.xlu0 %v3307_v47, %s4827_s30  ;;  %v4049_v47 = vld [vmem:[%s5590_s5 + $0xb0] sm:$0xff] }
0x14a6   :  { %v4617_v49 = vpack.c.bf16 %v4050_v48, %v4049_v47  ;;  %v4064_v47 = vld [vmem:[%s5587_s2 + $0x10] ss:$0 sm:$0xff] }
0x14d9   :  { %v3383_v51 = vpop.f32.mrb[44].mxu1 }
0x14da   :  { %3396 = vrot.lane.b32.xlu1 %v3383_v51, %s4829_s9  ;;  %v4449_v14 = vpop.f32.mrb[45].mxu1  ;;  %v4052_v51 = vld [vmem:[%s5590_s5 + $0xc8] sm:$0xff] }
0x14db   :  { %v4621_v14 = vpack.c.bf16 %v4052_v51, %v4051_v50 }
0x1513   :  { %v3389_v52 = vpop.permute.xlu0 %3388 }
0x1514   :  { %v3399_v54 = vsel %vm206_vm2, %v3155_v45, %v3389_v52  ;;  %v4048_v45 = vld [vmem:[%s5590_s5 + $0xa8] sm:$0xff]  ;;  %v4053_v52 = vld [vmem:[%s5590_s5 + $0xd0] sm:$0xff] }
0x1515   :  { %v4613_v46 = vpack.c.bf16 %v4048_v45, %v4047_v10 }
0x1517   :  { %v3393_v53 = vpop.permute.xlu0 %3392 }
0x1518   :  { %v3400_v56 = vsel %vm870_vm4, %v3399_v54, %v3393_v53  ;;  %v4054_v53 = vld [vmem:[%s5590_s5 + $0xd8] sm:$0xff] }
0x1519   :  { %v4625_v54 = vpack.c.bf16 %v4054_v53, %v4053_v52 }
0x154c   :  { %v3397_v57 = vpop.permute.xlu1 %3396 }
0x154d   :  { %v3401_v58 = vsel %vm872_vm5, %v3400_v56, %v3397_v57  ;;  %v4055_v56 = vld [vmem:[%s5590_s5 + $0xe0] sm:$0xff]  ;;  %v4056_v57 = vld [vmem:[%s5590_s5 + $0xe8] sm:$0xff] }
0x154e   :  { %4459 = vmatmul.mubr.msk.f32.vlgmr.msra.gmra.mrb[28].mxu0 %vm63_vm0, %v3401_v58  ;;  %v4629_v58 = vpack.c.bf16 %v4056_v57, %v4055_v56 }
0x154f   :  { %4608 = vmatpush3.bf16.msra.mxu0 %v4605_v36  ;;  %v3865_v36 = vld [vmem:[%s5591_s6 + $0x10] sm:$0xff]  ;;  %s4831_s6 = smov [#allocation5]  }
0x1550   :  { %4610 = vmatprep.subr.bf16.mxu0 %v4609_v42  ;;  %v4644_v39 = vpack.c.bf16 %v3866_v37, %v3865_v36  ;;  %s3947_s1 = sshll.u32 %s4831_s6, 4  ;;  %s3948_s1 = int_to_ptr.vmem [resolvable:$true] %s3947_s1 }
0x1551   :  { %s4791_s10 = scalar_lea.vmem %s3948_s1, 32  ;;  %p4796_p6 = scmp.lt.s32.totalorder %s3948_s1, %s3948_s1 }
0x1552   :  { %p4792_p5 = scmp.ne.s32.totalorder %s3948_s1, %s4791_s10  ;;  %p4797_p7 = scmp.lt.s32.totalorder %s4791_s10, %s4791_s10 }
0x1553   :  { %4612 = vmatpush3.bf16.msra.mxu0 %v4609_v42 }
0x1554   :  { %4614 = vmatprep.subr.bf16.mxu0 %v4613_v46  ;;  %p4798_p8 = por %p4797_p7, %p4796_p6 }
0x1556   :  { %p4799_p9 = pnand %p4798_p8, %p4792_p5 }
0x1557   :  { %4616 = vmatpush3.bf16.msra.mxu0 %v4613_v46 }
0x1558   :  { %4618 = vmatprep.subr.bf16.mxu0 %v4617_v49 }
0x155b   :  { %4620 = vmatpush3.bf16.msra.mxu0 %v4617_v49  ;;  %v4065_v49 = vld [vmem:[%s5587_s2 + $0x11] ss:$0 sm:$0xff] }
0x155c   :  { %4622 = vmatprep.subr.bf16.mxu0 %v4621_v14 }
0x155f   :  { %4624 = vmatpush3.bf16.msra.mxu0 %v4621_v14 }
0x1560   :  { %4626 = vmatprep.subr.bf16.mxu0 %v4625_v54 }
0x1563   :  { %4628 = vmatpush3.bf16.msra.mxu0 %v4625_v54 }
0x1564   :  { %4630 = vmatprep.subr.bf16.mxu0 %v4629_v58 }
0x1567   :  { %4632 = vmatpush3.bf16.msra.mxu0 %v4629_v58 }
0x1621   :  { %v4460_v62 = vpop.f32.mrb[28].mxu0 }
0x1622   :  { %v3500_v4 = vadd.f32 %v4460_v62, %v5229_v7  ;;  %v3490_v3 = vpop.f32.mrb[29].mxu0  ;;  %v4058_v62 = vld [vmem:[%s5590_s5 + $0xf8] sm:$0xff] }
0x1623   :  { %v3499_v63 = vadd.f32 %v3490_v3, %v5231_v8  ;;  %v4038_v3 = vld [vmem:[%s5587_s2 + $0xf] ss:$0 sm:$0xff] }
0x1624   :  { %v5457_v0 = vadd.f32 %v4031_v60, %v3500_v4 }
0x1625   :  { %v5459_v1 = vadd.f32 %v4031_v60, %v3499_v63  ;;  %v4057_v60 = vld [vmem:[%s5590_s5 + $0xf0] sm:$0xff]  ;;  %s4061_s5 = sld [smem:[#allocation2 + $0x1]] }
0x1626   :  { %v3510_v61 = vsel %vm63_vm0, %v5457_v0, 0.0  ;;  %v4633_v4 = vpack.c.bf16 %v4058_v62, %v4057_v60 }
0x1627   :  { %3511 = vadd.xlane.f32.xlu1 %v3510_v61  ;;  %v3507_v19 = vsel %vm63_vm0, %v5459_v1, 0.0 }
0x1628   :  { %3508 = vadd.xlane.f32.xlu0 %v3507_v19  ;;  %4634 = vmatprep.subr.bf16.mxu0 %v4633_v4 }
0x1629   :  { %4636 = vmatpush3.bf16.msra.mxu0 %v4633_v4 }
0x162b   :  { %s3757_s18 = sadd.s32 8, %s4061_s5 }
0x162c   :  { %v3758_v31 = vstv %s3757_s18 }
0x162d   :  { %vm3759_vm7 = vcmp.eq.s32.totalorder %v4981_v59, %v3758_v31 }
0x16b4   :  { %v3512_v22 = vpop.xlane.xlu1 %3511 }
0x16b5   :  { %v3514_v43 = vmul.f32 0.03125, %v3512_v22  ;;  %v3509_v30 = vpop.xlane.xlu0 %3508 }
0x16b6   :  { %v3513_v17 = vmul.f32 0.03125, %v3509_v30 }
0x16b7   :  { %v3516_v7 = vsub.f32 %v5457_v0, %v3514_v43 }
0x16b8   :  { %v3515_v8 = vsub.f32 %v5459_v1, %v3513_v17 }
0x16b9   :  { %v3518_v44 = vmul.f32 %v3516_v7, %v3516_v7 }
0x16ba   :  { %v3517_v18 = vmul.f32 %v3515_v8, %v3515_v8 }
0x16bb   :  { %v3522_v25 = vsel %vm63_vm0, %v3518_v44, 0.0 }
0x16bc   :  { %v3519_v20 = vsel %vm63_vm0, %v3517_v18, 0.0 }
0x16bd   :  { %3520 = vadd.xlane.f32.xlu0 %v3519_v20 }
0x16c1   :  { %3523 = vadd.xlane.f32.xlu0 %v3522_v25 }
0x174a   :  { %v3521_v32 = vpop.xlane.xlu0 %3520 }
0x174b   :  { %v3525_v34 = vmul.f32 0.03125, %v3521_v32  ;;  %v4059_v32 = vld [vmem:[%s5587_s2 + $0xd] ss:$0 sm:$0xff] }
0x174d   :  { %v3527_v2 = vadd.f32 1e-05, %v3525_v34 }
0x174e   :  { %v3524_v5 = vpop.xlane.xlu0 %3523 }
0x174f   :  { %4765 = vrsqrt.f32 %v3527_v2  ;;  %v3526_v6 = vmul.f32 0.03125, %v3524_v5 }
0x1751   :  { %v3528_v9 = vadd.f32 1e-05, %v3526_v6 }
0x1753   :  { %4767 = vrsqrt.f32 %v3528_v9 }
0x1759   :  { %v4766_v11 = vpop.eup %4765 }
0x175a   :  { %v3531_v13 = vmul.f32 %v4766_v11, %v3515_v8 }
0x175c   :  { %v3537_v55 = vmul.f32 %v4032_v12, %v3531_v13  ;;  %v4062_v13 = vsel %vm3759_vm7, 1.0, %v4818_v40 }
0x175d   :  { %v4768_v33 = vpop.eup %4767 }
0x175e   :  { %v3532_v16 = vmul.f32 %v4768_v33, %v3516_v7  ;;  %v3543_v21 = vadd.f32 %v4033_v15, %v3537_v55 }
0x1760   :  { %v3538_v23 = vmul.f32 %v4032_v12, %v3532_v16  ;;  %4469 = vmatprep.mubr.msk.f32.mxu1 %vm63_vm0, %v3543_v21  ;;  %v4060_v12 = vsel %vm3753_vm6, 1.0, %v4818_v40 }
0x1761   :  { %v3763_v55 = vsel %vm3762_vm8, %v4060_v12, %v4062_v13 }
0x1762   :  { %v3544_v24 = vadd.f32 %v4033_v15, %v3538_v23 }
0x1764   :  { %4470 = vmatmul.mubr.msk.f32.vlgmr.msra.gmra.mrb[46].mxu1 %vm63_vm0, %v3544_v24 }
0x1765   :  { %4511 = vmatprep.mubr.msk.f32.mxu1 %vm4819_vm1, %v4818_v40 }
0x1837   :  { %v4471_v63 = vpop.f32.mrb[46].mxu1 }
0x1838   :  { %v3632_v61 = vadd.f32 %v4471_v63, %v4038_v3  ;;  %v3626_v19 = vpop.f32.mrb[47].mxu1 }
0x1839   :  { %v3627_v22 = vadd.f32 %v4038_v3, %v3626_v19 }
0x183a   :  { %v4042_v43 = vmul.f32 -1.702, %v3632_v61 }
0x183b   :  { %v4041_v30 = vmul.f32 -1.702, %v3627_v22 }
0x183c   :  { %v3641_v17 = vmul.f32 1.442695, %v4042_v43 }
0x183d   :  { %v3639_v7 = vmul.f32 1.442695, %v4041_v30 }
0x183e   :  { %4769 = vpow2.f32 %v3641_v17 }
0x183f   :  { %4771 = vpow2.f32 %v3639_v7 }
0x1848   :  { %v4770_v8 = vpop.eup %4769 }
0x1849   :  { %v4772_v18 = vpop.eup %4771  ;;  %v3644_v20 = vadd.f32 1.0, %v4770_v8 }
0x184a   :  { %v3643_v44 = vadd.f32 1.0, %v4772_v18 }
0x184b   :  { %4773 = vrcp.f32 %v3644_v20 }
0x184c   :  { %4775 = vrcp.f32 %v3643_v44 }
0x1855   :  { %v4774_v25 = vpop.eup %4773 }
0x1856   :  { %v4776_v26 = vpop.eup %4775  ;;  %v3650_v28 = vmul.f32 %v4774_v25, %v3632_v61 }
0x1857   :  { %v3649_v29 = vmul.f32 %v4776_v26, %v3627_v22 }
0x1859   :  { %4504 = vmatprep.mubr.f32.mxu0 %v3649_v29 }
0x185a   :  { %4505 = vmatmul.mubr.f32.vlgmr.msra.gmra.mrb[30].mxu0 %v3650_v28 }
0x192d   :  { %v4506_v34 = vpop.f32.mrb[30].mxu0 }
0x192e   :  { %v3744_v2 = vadd.f32 %v4506_v34, %v5457_v0  ;;  %v3734_v5 = vpop.f32.mrb[31].mxu0 }
0x192f   :  { %v3743_v6 = vadd.f32 %v3734_v5, %v5459_v1 }
0x1930   :  { %v3750_v9 = vadd.f32 %v4059_v32, %v3744_v2 }
0x1931   :  { %v3749_v11 = vadd.f32 %v4059_v32, %v3743_v6 }
0x1933   :  { %v4638_v15 = vpack.c.bf16 %v3750_v9, %v3749_v11 }
0x1935   :  { %4639 = vmatpush3.bf16.msra.mxu1 %v4638_v15 }
0x1936   :  { %4640 = vmatprep.subr.bf16.mxu1 %v4830_v38 }
0x1938   :  { %4512 = vmatmul.mubr.msk.f32.vlgmr.msra.gmra.mrb[48].mxu1 %vm870_vm4, %v3763_v55 }
0x1939   :  { %4522 = vmatprep.mubr.msk.f32.mxu1 %vm4819_vm1, %v4818_v40  ;;  %v4641_v40 = vpack.c.bf16 %v3864_v35, %v3863_v27 }
0x193b   :  { %4642 = vmatpush3.bf16.msra.mxu1 %v4641_v40 }
0x193c   :  { %4643 = vmatprep.subr.bf16.mxu1 %v4830_v38 }
0x193f   :  { %4645 = vmatpush3.bf16.msra.mxu1 %v4644_v39 }
0x1a0b   :  { %v3833_v0 = vpop.f32.mrb[48].mxu1 }
0x1a0c   :  { %v4513_v1 = vpop.f32.mrb[49].mxu1  ;;  %v3840_v59 = vsel %vm3839_vm9, %v3833_v0, 0.0 }
0x1a0d   :  { %3841 = vadd.xlane.f32.xlu0 %v3840_v59 }
0x1a9a   :  { %v3842_v33 = vpop.xlane.xlu0 %3841 }
0x1a9b   :  { %v3843_v16 = vmul.f32 0.03125, %v3842_v33 }
0x1a9d   :  { %v3844_v21 = vsub.f32 %v3833_v0, %v3843_v16 }
0x1a9f   :  { %v3845_v23 = vmul.f32 %v3844_v21, %v3844_v21 }
0x1aa1   :  { %v3846_v24 = vsel %vm3839_vm9, %v3845_v23, 0.0 }
0x1aa2   :  { %3847 = vadd.xlane.f32.xlu1 %v3846_v24 }
0x1b2f   :  { %v3848_v42 = vpop.xlane.xlu1 %3847 }
0x1b30   :  { %v3849_v10 = vmul.f32 0.03125, %v3848_v42 }
0x1b32   :  { %v3850_v45 = vadd.f32 1e-05, %v3849_v10 }
0x1b34   :  { %4777 = vrsqrt.f32 %v3850_v45 }
0x1b3e   :  { %v4778_v46 = vpop.eup %4777 }
0x1b3f   :  { %v3852_v48 = vmul.f32 %v4778_v46, %v3844_v21 }
0x1b41   :  { %v3857_v50 = vmul.f32 %v4064_v47, %v3852_v48 }
0x1b43   :  { %v3862_v51 = vadd.f32 %v4065_v49, %v3857_v50 }
0x1b45   :  { %4523 = vmatmul.mubr.msk.f32.vlgmr.msra.gmra.mrb[50].mxu1 %vm63_vm0, %v3862_v51 }
0x1c18   :  { %v3936_v14 = vpop.f32.mrb[50].mxu1 }
0x1c19   :  { %3940 = vst [vmem:[#allocation5] sm:$0x3] %v3936_v14  ;;  %v4524_v52 = vpop.f32.mrb[51].mxu1 }
0x1c1a   :  { %4802 = shalt.err (!%p4799_p9)
}
0x1c1b   :  { %s4803_s2 = scalar_lea.hbm %s5592_s7, 32 }
0x1c1c   :  { %p4804_p10 = scmp.ne.s32.totalorder %s5592_s7, %s4803_s2  ;;  %p4807_p11 = scmp.lt.u32.totalorder %s4803_s2, %s5592_s7 }
0x1c1e   :  { %p4809_p12 = pnand %p4807_p11, %p4804_p10 }
0x1c20   :  { %4812 = shalt.err (!%p4809_p12)
}
0x1c21   :  { %3950 = dma.vmem_to_hbm [thread:$0]  %s3948_s1, 32, %s5592_s7, [#allocation3]  }
0x1c22   :  { %4815 = dma.done.wait [#allocation3], 32  }
0x1c23   :  { %4816 = vsyncadd [#allocation3], 4294967264 }
0x1c24   :  { %3954 = vsyncpa [#allocation3], 1 }
0x1c25   :  { %3955 = vsyncpa [#allocation4], 1 }

</bundles_post_ra>
